<compile_context>
chip_gen: v7x
topology: tpu7x:2x2x1
jax: 0.10.0
libtpu: 0.0.40
codegen_flags: <defaults>
</compile_context>

<pallas_src>
import functools

import jax
import jax.numpy as jnp
import numpy as np
from jax import lax
from jax.experimental import pallas as pl
from jax.experimental.pallas import tpu as pltpu

IGNORE_INDEX = -100


def _rsna_loss_kernel(logits_ref, targets_ref, out_ref, *,
                      class_weight, condition_weight, levels):
    """logits_ref: (B, P, 3) any float dtype (natural memory order),
    targets_ref: (B, P, 1) int32, out_ref: (1, 1) f32."""
    B, P, K = logits_ref.shape
    L = levels
    C = len(condition_weight)

    x = logits_ref[...].astype(jnp.float32)          # (B, P, 3), f32 math (v5e-safe)
    y = targets_ref[...]                             # (B, P, 1) int32

    # Three class planes as static lane slices -- no relayout, no transpose.
    x0 = x[:, :, 0:1]                                # (B, P, 1)
    x1 = x[:, :, 1:2]
    x2 = x[:, :, 2:3]

    # log-sum-exp over the (unrolled) class axis: pure VPU elementwise + EUP.
    m = jnp.maximum(jnp.maximum(x0, x1), x2)
    e0 = jnp.exp(x0 - m)
    e1 = jnp.exp(x1 - m)
    e2 = jnp.exp(x2 - m)
    lse = jnp.log(e0 + e1 + e2) + m                  # (B, P, 1)

    valid = y != IGNORE_INDEX                        # (B, P, 1) bool

    # Gather target logit / class weight with selects (no one-hot, no MXU).
    tgt_logit = jnp.where(y == 0, x0, jnp.where(y == 1, x1, x2))
    # Zero ignored rows *before* weighting so NaN/Inf logits there can't poison.
    nll = jnp.where(valid, lse - tgt_logit, jnp.float32(0.0))

    w0, w1, w2 = (jnp.float32(w) for w in class_weight)
    w = jnp.where(y == 0, w0, jnp.where(y == 1, w1, w2))
    w = jnp.where(valid, w, jnp.float32(0.0))

    # Per-(condition, level) weighted-mean CE (matches nn.CrossEntropyLoss with
    # class weights + ignore_index).  Reduce over the batch (leading) axis.
    loss_sum = jnp.sum(w * nll, axis=0)              # (P, 1)
    w_sum = jnp.sum(w, axis=0)                       # (P, 1)
    pair_valid = w_sum > jnp.float32(0.0)            # == "any valid" (weights > 0)
    pair_loss = jnp.where(pair_valid,
                          loss_sum / jnp.maximum(w_sum, 1e-30),
                          jnp.float32(0.0))          # (P, 1)

    # condition_weight baked in as compile-time constants: build the (P, 1)
    # per-pair weight row from a sublane iota + select chain (no input, no DMA).
    pi = lax.broadcasted_iota(jnp.int32, (P, 1), 0)
    cw = jnp.full((P, 1), condition_weight[C - 1], dtype=jnp.float32)
    for c in range(C - 2, -1, -1):
        cw = jnp.where(pi < (c + 1) * L, jnp.float32(condition_weight[c]), cw)
    pair_loss = pair_loss * cw

    n_valid_pairs = jnp.sum(pair_valid.astype(jnp.float32))
    # NOTE: if *every* target is IGNORE_INDEX the PyTorch module would fail on
    # an empty stack; we return 0.0 instead (documented divergence).
    overall = jnp.sum(pair_loss) / jnp.maximum(n_valid_pairs, 1.0)

    out_ref[...] = jnp.reshape(overall, (1, 1))


def rsna2024_loss(logits, targets, class_weight, condition_weight):
    """logits: (B, C, L, K=3) float (f32 or bf16); targets: (B, C, L) int with
    -100 = ignore.  Returns dict like the PyTorch module (sevear_loss=False
    path) with jnp scalars (jit/grad friendly, no host sync)."""
    B, C, L, K = logits.shape
    assert K == 3, "kernel unrolls the 3-class severity axis"
    P = C * L

    # Metadata-only reshapes of the contiguous arrays -- no relayout pass.
    logits_r = logits.reshape(B, P, K)
    targets_r = targets.reshape(B, P, 1).astype(jnp.int32)

    kernel = functools.partial(
        _rsna_loss_kernel,
        class_weight=tuple(float(w) for w in class_weight),
        condition_weight=tuple(float(w) for w in condition_weight),
        levels=L,
    )

    bytes_accessed = int(logits_r.size * logits_r.dtype.itemsize
                         + targets_r.size * 4 + 4)

    # TODO(synk): for training-scale B (>~64) add a 1-D grid over B
    # (dimension_semantics=("parallel",) for v7x's 2 TensorCores), put B on the
    # 128-lane axis ((3, P, B) planes, lane reductions), and mind v7x's 64 MiB
    # VMEM (raise vmem_limit_bytes / tile B) -- at current sizes the call is
    # launch-bound and a grid would only add per-step overhead.
    out = pl.pallas_call(
        kernel,
        out_shape=jax.ShapeDtypeStruct((1, 1), jnp.float32),
        in_specs=[
            pl.BlockSpec(memory_space=pltpu.MemorySpace.VMEM),
            pl.BlockSpec(memory_space=pltpu.MemorySpace.VMEM),
        ],
        out_specs=pl.BlockSpec(memory_space=pltpu.MemorySpace.VMEM),
        cost_estimate=pl.CostEstimate(
            flops=20 * B * P,
            transcendentals=4 * B * P,
            bytes_accessed=bytes_accessed,
        ),
    )(logits_r, targets_r)

    overall = out[0, 0]
    # TODO(synk): sevear_loss=True branch (severe-probability log loss) not
    # implemented; default module config has sevear_loss=False.
    return {"overall_loss": overall, "loss": overall}


def _reference_loss(logits, targets, class_weight, condition_weight):
    """Pure-JAX replica of the PyTorch forward (default config)."""
    B, C, L, K = logits.shape
    cls_w = jnp.asarray(class_weight, jnp.float32)
    losses = []
    for c in range(C):
        for l in range(L):
            x = logits[:, c, l].astype(jnp.float32)
            y = targets[:, c, l]
            valid = y != IGNORE_INDEX
            if not bool(np.any(np.asarray(valid))):
                continue
            logp = jax.nn.log_softmax(x, axis=-1)
            ys = jnp.where(valid, y, 0)
            nll = -jnp.take_along_axis(logp, ys[:, None], axis=1)[:, 0]
            w = cls_w[ys] * valid.astype(jnp.float32)
            losses.append(jnp.sum(w * nll) / jnp.sum(w) * condition_weight[c])
    return jnp.mean(jnp.stack(losses))


if __name__ == "__main__":
    # Module-implied shapes: 5 conditions x 5 levels x 3 severity classes.
    B, C, L, K = 4, 5, 5, 3
    key = jax.random.PRNGKey(0)
    k_logits, k_tgt, k_ign = jax.random.split(key, 3)

    logits = jax.random.normal(k_logits, (B, C, L, K), dtype=jnp.float32)
    targets = jax.random.randint(k_tgt, (B, C, L), 0, K, dtype=jnp.int32)
    # sprinkle some ignore_index (-100) labels to exercise the masking path
    ignore_mask = jax.random.uniform(k_ign, (B, C, L)) < 0.2
    targets = jnp.where(ignore_mask, jnp.int32(IGNORE_INDEX), targets)

    class_weight = [1.0, 2.0, 4.0]                       # ce_loss weight
    condition_weight = [1.0, 0.5, 2.0, 1.0, 1.5]         # non-trivial weighting

    loss_fn = jax.jit(
        lambda lg, tg: rsna2024_loss(lg, tg, class_weight, condition_weight)
    )
    result = loss_fn(logits, targets)
    loss = jax.block_until_ready(result["loss"])

    ref = _reference_loss(logits, targets, class_weight, condition_weight)
    np.testing.assert_allclose(np.asarray(loss), np.asarray(ref), rtol=1e-5, atol=1e-5)

    print("KERNEL_OK")
</pallas_src>

<mosaic_0001>
module attributes {stable_mosaic.version = 11 : i64} {
  func.func @_rsna_loss_kernel(%arg0: memref<4x25x3xf32, #tpu.memory_space<vmem>>, %arg1: memref<4x25x1xi32, #tpu.memory_space<vmem>>, %arg2: memref<1x1xf32, #tpu.memory_space<vmem>>) attributes {dimension_semantics = [], scalar_prefetch = 0 : i64, scratch_operands = 0 : i64, tpu.core_type = #tpu.core_type<tc>} {
    %c0 = arith.constant 0 : index
    %c0_0 = arith.constant 0 : index
    %c0_1 = arith.constant 0 : index
    %0 = vector.load %arg0[%c0, %c0_0, %c0_1] : memref<4x25x3xf32, #tpu.memory_space<vmem>>, vector<4x25x3xf32>
    %c0_2 = arith.constant 0 : index
    %c0_3 = arith.constant 0 : index
    %c0_4 = arith.constant 0 : index
    %1 = vector.load %arg1[%c0_2, %c0_3, %c0_4] : memref<4x25x1xi32, #tpu.memory_space<vmem>>, vector<4x25x1xi32>
    %2 = vector.extract_strided_slice %0 {offsets = [0, 0, 0], sizes = [4, 25, 1], strides = [1, 1, 1]} : vector<4x25x3xf32> to vector<4x25x1xf32>
    %3 = vector.extract_strided_slice %0 {offsets = [0, 0, 1], sizes = [4, 25, 1], strides = [1, 1, 1]} : vector<4x25x3xf32> to vector<4x25x1xf32>
    %4 = vector.extract_strided_slice %0 {offsets = [0, 0, 2], sizes = [4, 25, 1], strides = [1, 1, 1]} : vector<4x25x3xf32> to vector<4x25x1xf32>
    %5 = arith.maximumf %2, %3 : vector<4x25x1xf32>
    %6 = arith.maximumf %5, %4 : vector<4x25x1xf32>
    %7 = arith.subf %2, %6 : vector<4x25x1xf32>
    %8 = math.exp %7 : vector<4x25x1xf32>
    %9 = arith.subf %3, %6 : vector<4x25x1xf32>
    %10 = math.exp %9 : vector<4x25x1xf32>
    %11 = arith.subf %4, %6 : vector<4x25x1xf32>
    %12 = math.exp %11 : vector<4x25x1xf32>
    %13 = arith.addf %8, %10 : vector<4x25x1xf32>
    %14 = arith.addf %13, %12 : vector<4x25x1xf32>
    %15 = math.log %14 : vector<4x25x1xf32>
    %16 = arith.addf %15, %6 : vector<4x25x1xf32>
    %c-100_i32 = arith.constant -100 : i32
    %17 = vector.broadcast %c-100_i32 : i32 to vector<4x25x1xi32>
    %18 = arith.cmpi ne, %1, %17 : vector<4x25x1xi32>
    %c0_i32 = arith.constant 0 : i32
    %19 = vector.broadcast %c0_i32 : i32 to vector<4x25x1xi32>
    %20 = arith.cmpi eq, %1, %19 : vector<4x25x1xi32>
    %c1_i32 = arith.constant 1 : i32
    %21 = vector.broadcast %c1_i32 : i32 to vector<4x25x1xi32>
    %22 = arith.cmpi eq, %1, %21 : vector<4x25x1xi32>
    %23 = arith.select %22, %3, %4 : vector<4x25x1xi1>, vector<4x25x1xf32>
    %24 = arith.select %20, %2, %23 : vector<4x25x1xi1>, vector<4x25x1xf32>
    %25 = arith.subf %16, %24 : vector<4x25x1xf32>
    %cst = arith.constant 0.000000e+00 : f32
    %26 = vector.broadcast %cst : f32 to vector<4x25x1xf32>
    %27 = arith.select %18, %25, %26 : vector<4x25x1xi1>, vector<4x25x1xf32>
    %c0_i32_5 = arith.constant 0 : i32
    %28 = vector.broadcast %c0_i32_5 : i32 to vector<4x25x1xi32>
    %29 = arith.cmpi eq, %1, %28 : vector<4x25x1xi32>
    %c1_i32_6 = arith.constant 1 : i32
    %30 = vector.broadcast %c1_i32_6 : i32 to vector<4x25x1xi32>
    %31 = arith.cmpi eq, %1, %30 : vector<4x25x1xi32>
    %cst_7 = arith.constant 2.000000e+00 : f32
    %cst_8 = arith.constant 4.000000e+00 : f32
    %32 = vector.broadcast %cst_7 : f32 to vector<4x25x1xf32>
    %33 = vector.broadcast %cst_8 : f32 to vector<4x25x1xf32>
    %34 = arith.select %31, %32, %33 : vector<4x25x1xi1>, vector<4x25x1xf32>
    %cst_9 = arith.constant 1.000000e+00 : f32
    %35 = vector.broadcast %cst_9 : f32 to vector<4x25x1xf32>
    %36 = arith.select %29, %35, %34 : vector<4x25x1xi1>, vector<4x25x1xf32>
    %cst_10 = arith.constant 0.000000e+00 : f32
    %37 = vector.broadcast %cst_10 : f32 to vector<4x25x1xf32>
    %38 = arith.select %18, %36, %37 : vector<4x25x1xi1>, vector<4x25x1xf32>
    %39 = arith.mulf %38, %27 : vector<4x25x1xf32>
    %cst_11 = arith.constant dense<0.000000e+00> : vector<25x1xf32>
    %40 = vector.multi_reduction <add>, %39, %cst_11 [0] : vector<4x25x1xf32> to vector<25x1xf32>
    %cst_12 = arith.constant dense<0.000000e+00> : vector<25x1xf32>
    %41 = vector.multi_reduction <add>, %38, %cst_12 [0] : vector<4x25x1xf32> to vector<25x1xf32>
    %cst_13 = arith.constant 0.000000e+00 : f32
    %42 = vector.broadcast %cst_13 : f32 to vector<25x1xf32>
    %43 = arith.cmpf ogt, %41, %42 : vector<25x1xf32>
    %cst_14 = arith.constant 1.000000e-30 : f32
    %44 = vector.broadcast %cst_14 : f32 to vector<25x1xf32>
    %45 = arith.maximumf %41, %44 : vector<25x1xf32>
    %46 = arith.divf %40, %45 : vector<25x1xf32>
    %cst_15 = arith.constant 0.000000e+00 : f32
    %47 = vector.broadcast %cst_15 : f32 to vector<25x1xf32>
    %48 = arith.select %43, %46, %47 : vector<25x1xi1>, vector<25x1xf32>
    %49 = tpu.iota {dimensions = array<i32: 0>} : vector<25x1xi32>
    %cst_16 = arith.constant 1.500000e+00 : f32
    %50 = vector.broadcast %cst_16 : f32 to vector<25x1xf32>
    %c20_i32 = arith.constant 20 : i32
    %51 = vector.broadcast %c20_i32 : i32 to vector<25x1xi32>
    %52 = arith.cmpi slt, %49, %51 : vector<25x1xi32>
    %cst_17 = arith.constant 1.000000e+00 : f32
    %53 = vector.broadcast %cst_17 : f32 to vector<25x1xf32>
    %54 = arith.select %52, %53, %50 : vector<25x1xi1>, vector<25x1xf32>
    %c15_i32 = arith.constant 15 : i32
    %55 = vector.broadcast %c15_i32 : i32 to vector<25x1xi32>
    %56 = arith.cmpi slt, %49, %55 : vector<25x1xi32>
    %cst_18 = arith.constant 2.000000e+00 : f32
    %57 = vector.broadcast %cst_18 : f32 to vector<25x1xf32>
    %58 = arith.select %56, %57, %54 : vector<25x1xi1>, vector<25x1xf32>
    %c10_i32 = arith.constant 10 : i32
    %59 = vector.broadcast %c10_i32 : i32 to vector<25x1xi32>
    %60 = arith.cmpi slt, %49, %59 : vector<25x1xi32>
    %cst_19 = arith.constant 5.000000e-01 : f32
    %61 = vector.broadcast %cst_19 : f32 to vector<25x1xf32>
    %62 = arith.select %60, %61, %58 : vector<25x1xi1>, vector<25x1xf32>
    %c5_i32 = arith.constant 5 : i32
    %63 = vector.broadcast %c5_i32 : i32 to vector<25x1xi32>
    %64 = arith.cmpi slt, %49, %63 : vector<25x1xi32>
    %cst_20 = arith.constant 1.000000e+00 : f32
    %65 = vector.broadcast %cst_20 : f32 to vector<25x1xf32>
    %66 = arith.select %64, %65, %62 : vector<25x1xi1>, vector<25x1xf32>
    %67 = arith.mulf %48, %66 : vector<25x1xf32>
    %68 = arith.extui %43 : vector<25x1xi1> to vector<25x1xi32>
    %69 = arith.sitofp %68 : vector<25x1xi32> to vector<25x1xf32>
    %70 = vector.shape_cast %69 : vector<25x1xf32> to vector<1x25x1xf32>
    %cst_21 = arith.constant dense<0.000000e+00> : vector<1xf32>
    %71 = vector.multi_reduction <add>, %70, %cst_21 [1, 2] : vector<1x25x1xf32> to vector<1xf32>
    %72 = vector.shape_cast %71 : vector<1xf32> to vector<1x1x1xf32>
    %73 = vector.extract %72[0, 0, 0] : f32 from vector<1x1x1xf32>
    %74 = vector.shape_cast %67 : vector<25x1xf32> to vector<1x25x1xf32>
    %cst_22 = arith.constant dense<0.000000e+00> : vector<1xf32>
    %75 = vector.multi_reduction <add>, %74, %cst_22 [1, 2] : vector<1x25x1xf32> to vector<1xf32>
    %76 = vector.shape_cast %75 : vector<1xf32> to vector<1x1x1xf32>
    %77 = vector.extract %76[0, 0, 0] : f32 from vector<1x1x1xf32>
    %cst_23 = arith.constant 1.000000e+00 : f32
    %78 = arith.maximumf %73, %cst_23 : f32
    %79 = arith.divf %77, %78 : f32
    %80 = vector.broadcast %79 : f32 to vector<1x1xf32>
    %c0_24 = arith.constant 0 : index
    %c0_25 = arith.constant 0 : index
    %81 = vector.load %arg2[%c0_24, %c0_25] : memref<1x1xf32, #tpu.memory_space<vmem>>, vector<1x1xf32>
    tpu.vector_store %arg2[%c0_24, %c0_25], %80 {strides = array<i32>} : memref<1x1xf32, #tpu.memory_space<vmem>>, vector<1x1xf32>,
    return
  }
}

</mosaic_0001>

<bundles_post_ra>
// kernel: _lambda_.1
= control target key start
LH: loop header
LB: loop body
LE: loop exit
PB: predicated region body
PF: predicated region fallthrough
CT: control target
= control target key end

     0   :  { %s1207_s13 = smov 127   ;;  %s2314_s0 = inlined_call_operand.vmem [shape: f32[4,25,3], index: 0, kind: input, shape index: {}]   ;;  %s2315_s1 = inlined_call_operand.vmem [shape: s32[4,25,1], index: 1, kind: input, shape index: {}]   ;;  %s2316_s2 = inlined_call_operand.hbm [shape: f32[1,1], index: 2, kind: output, shape index: {}]  }
   0x1   :  { %v1236_v0 = vld [vmem:[%s2314_s0 + $0x20] sm:$0xff]  ;;  %v1250_v2 = vld [vmem:[%s2314_s0 + $0x28] sm:$0xff]  ;;  %v1264_v4 = vld [vmem:[%s2314_s0 + $0x30] sm:$0xff] }
   0x2   :  { %v1241_v1 = vld [vmem:[%s2314_s0] sm:$0xff]  ;;  %68 = vrot.lane.b32.xlu1 %v1236_v0, %s1207_s13  ;;  %v1255_v3 = vld [vmem:[%s2314_s0 + $0x8] sm:$0xff]  ;;  %v1269_v5 = vld [vmem:[%s2314_s0 + $0x10] sm:$0xff] }
   0x3   :  { %60 = vrot.lane.b32.xlu0 %v1241_v1, %s1207_s13 }
   0x6   :  { %70 = vrot.lane.b32.xlu1 %v1250_v2, %s1207_s13 }
   0x7   :  { %62 = vrot.lane.b32.xlu0 %v1255_v3, %s1207_s13 }
   0x8   :  { %7 = vsyncpa [#allocation3], 0  ;;  %v1278_v6 = vld [vmem:[%s2314_s0 + $0x48] sm:$0xff]  ;;  %v1283_v7 = vld [vmem:[%s2314_s0 + $0x40] sm:$0xff]  ;;  %s1208_s26 = smov 126   ;;  %s1209_s24 = smov 1  }
   0x9   :  { %v1300_v8 = vld [vmem:[%s2314_s0 + $0x38] sm:$0x1]  ;;  %v1314_v10 = vld [vmem:[%s2314_s0 + $0x60] sm:$0xff]  ;;  %v1319_v11 = vld [vmem:[%s2314_s0 + $0x50] sm:$0xff]  ;;  %s1210_s8 = smov 2   ;;  %vm828_vm14 = vcmask 7168  }
   0xa   :  { %72 = vrot.lane.b32.xlu1 %v1264_v4, %s1207_s13  ;;  %v1305_v9 = vld [vmem:[%s2314_s0 + $0x18] sm:$0x1]  ;;  %v1328_v12 = vld [vmem:[%s2314_s0 + $0x68] sm:$0xff]  ;;  %v1350_v14 = vld [vmem:[%s2314_s0 + $0x70] sm:$0xff]  ;;  %s1217_s28 = smov [#allocation2]  }
   0xb   :  { %64 = vrot.lane.b32.xlu0 %v1269_v5, %s1207_s13  ;;  %v1341_v13 = vld [vmem:[%s2314_s0 + $0x58] sm:$0x1]  ;;  %v1380_v22 = vld [vmem:[%s2315_s1 + $0x8] sm:$0xff]  ;;  %v1385_v23 = vld [vmem:[%s2315_s1] sm:$0xff]  ;;  %s1000_s29 = sshll.u32 %s1217_s28, 4  ;;  %s1001_s29 = int_to_ptr.vmem [resolvable:$true] %s1000_s29 }
   0xc   :  { %v1367_v15 = vld [vmem:[%s2314_s0 + $0x78] sm:$0x1]  ;;  %vm685_vm0 = vcmp.eq.s32.totalorder %v1380_v22, 1  ;;  %vm684_vm1 = vcmp.eq.s32.totalorder %v1385_v23, 1  ;;  %v1396_v28 = vld [vmem:[%s2315_s1 + $0x28] sm:$0xff]  ;;  %v1401_v31 = vld [vmem:[%s2315_s1 + $0x20] sm:$0xff]  ;;  %p1188_p1 = scmp.lt.s32.totalorder %s1001_s29, %s1001_s29 }
   0xd   :  { %vm689_vm2 = vcmp.eq.s32.totalorder %v1396_v28, 1  ;;  %vm688_vm3 = vcmp.eq.s32.totalorder %v1401_v31, 1  ;;  %v1444_v46 = vld [vmem:[%s2315_s1 + $0x10] sm:$0xff]  ;;  %v1453_v50 = vld [vmem:[%s2315_s1 + $0x40] sm:$0xff]  ;;  %v1477_v60 = vld [vmem:[%s2315_s1 + $0x48] sm:$0xff]  ;;  %vm669_vm15 = vcmp.eq.s32.totalorder %v1380_v22, 0 }
   0xe   :  { %78 = vrot.lane.b32.xlu1 %v1278_v6, %s1207_s13  ;;  %vm686_vm4 = vcmp.eq.s32.totalorder %v1444_v46, 1  ;;  %v1460_v53 = vld [vmem:[%s2315_s1 + $0x30] sm:$0xff]  ;;  %vm692_vm5 = vcmp.eq.s32.totalorder %v1453_v50, 1  ;;  %vm693_vm7 = vcmp.eq.s32.totalorder %v1477_v60, 1  ;;  %s1183_s4 = scalar_lea.vmem %s1001_s29, 16  ;;  %s1187_s5 = scalar_lea.vmem %s1001_s29, 32 }
   0xf   :  { %76 = vrot.lane.b32.xlu0 %v1283_v7, %s1207_s13  ;;  %vm690_vm6 = vcmp.eq.s32.totalorder %v1460_v53, 1  ;;  %p1184_p0 = scmp.ne.s32.totalorder %s1001_s29, %s1183_s4  ;;  %p1189_p2 = scmp.lt.s32.totalorder %s1187_s5, %s1183_s4 }
  0x11   :  { %p1190_p3 = por %p1189_p2, %p1188_p1 }
  0x12   :  { %126 = vrot.lane.b32.xlu1 %v1255_v3, %s1208_s26 }
  0x13   :  { %124 = vrot.lane.b32.xlu0 %v1241_v1, %s1208_s26  ;;  %p1191_p4 = pnand %p1190_p3, %p1184_p0 }
  0x16   :  { %134 = vrot.lane.b32.xlu1 %v1250_v2, %s1208_s26 }
  0x17   :  { %132 = vrot.lane.b32.xlu0 %v1236_v0, %s1208_s26 }
  0x1a   :  { %74 = vrot.lane.b32.xlu1 %v1300_v8, %s1207_s13 }
  0x1b   :  { %66 = vrot.lane.b32.xlu0 %v1305_v9, %s1207_s13 }
  0x1e   :  { %84 = vrot.lane.b32.xlu1 %v1314_v10, %s1207_s13 }
  0x1f   :  { %80 = vrot.lane.b32.xlu0 %v1319_v11, %s1207_s13 }
  0x22   :  { %128 = vrot.lane.b32.xlu1 %v1269_v5, %s1208_s26 }
  0x23   :  { %86 = vrot.lane.b32.xlu0 %v1328_v12, %s1207_s13 }
  0x26   :  { %140 = vrot.lane.b32.xlu1 %v1283_v7, %s1208_s26 }
  0x27   :  { %136 = vrot.lane.b32.xlu0 %v1264_v4, %s1208_s26 }
  0x2a   :  { %82 = vrot.lane.b32.xlu1 %v1341_v13, %s1207_s13 }
  0x2b   :  { %142 = vrot.lane.b32.xlu0 %v1278_v6, %s1208_s26 }
  0x2e   :  { %130 = vrot.lane.b32.xlu1 %v1305_v9, %s1208_s26 }
  0x2f   :  { %88 = vrot.lane.b32.xlu0 %v1350_v14, %s1207_s13 }
  0x32   :  { %144 = vrot.lane.b32.xlu1 %v1319_v11, %s1208_s26 }
  0x33   :  { %138 = vrot.lane.b32.xlu0 %v1300_v8, %s1208_s26 }
  0x36   :  { %150 = vrot.lane.b32.xlu1 %v1328_v12, %s1208_s26 }
  0x37   :  { %148 = vrot.lane.b32.xlu0 %v1314_v10, %s1208_s26 }
  0x3a   :  { %146 = vrot.lane.b32.xlu1 %v1341_v13, %s1208_s26 }
  0x3b   :  { %90 = vrot.lane.b32.xlu0 %v1367_v15, %s1207_s13 }
  0x3e   :  { %154 = vrot.lane.b32.xlu1 %v1367_v15, %s1208_s26 }
  0x3f   :  { %152 = vrot.lane.b32.xlu0 %v1350_v14, %s1208_s26 }
  0x74   :  { %v69_v16 = vpop.permute.xlu1 %68 }
  0x75   :  { %v61_v17 = vpop.permute.xlu0 %60  ;;  %v112_v37 = vmax.f32 %v1236_v0, %v69_v16 }
  0x76   :  { %v108_v26 = vmax.f32 %v1241_v1, %v61_v17 }
  0x78   :  { %v71_v18 = vpop.permute.xlu1 %70 }
  0x79   :  { %v63_v19 = vpop.permute.xlu0 %62  ;;  %v113_v36 = vmax.f32 %v1250_v2, %v71_v18 }
  0x7a   :  { %v109_v27 = vmax.f32 %v1255_v3, %v63_v19 }
  0x7c   :  { %v73_v20 = vpop.permute.xlu1 %72 }
  0x7d   :  { %v65_v21 = vpop.permute.xlu0 %64  ;;  %v114_v56 = vmax.f32 %v1264_v4, %v73_v20 }
  0x7e   :  { %v110_v49 = vmax.f32 %v1269_v5, %v65_v21 }
  0x80   :  { %v1387_v24 = vpop.permute.xlu1 %78 }
  0x81   :  { %v77_v25 = vpop.permute.xlu0 %76 }
  0x82   :  { %v116_v57 = vmax.f32 %v1283_v7, %v77_v25 }
  0x84   :  { %v127_v29 = vpop.permute.xlu1 %126 }
  0x85   :  { %v125_v30 = vpop.permute.xlu0 %124  ;;  %v1403_v32 = vmax.f32 %v109_v27, %v127_v29  ;;  %v1407_v33 = vsel %vm685_vm0, %v63_v19, %v127_v29 }
  0x86   :  { %v1409_v34 = vmax.f32 %v108_v26, %v125_v30  ;;  %v1413_v35 = vsel %vm684_vm1, %v61_v17, %v125_v30  ;;  %v117_v17 = vmax.f32 %v1278_v6, %v1387_v24  ;;  %v1518_v26 = vld [vmem:[%s2315_s1 + $0x50] sm:$0xff] }
  0x87   :  { %254 = vrot.lane.b32.xlu1 %v1403_v32, %s1209_s24  ;;  %2397 = vst [vmem:[#allocation11_spill] sm:$0xff] %v1518_v26  ;;  %vm694_vm9 = vcmp.eq.s32.totalorder %v1518_v26, 1 }
  0x88   :  { %252 = vrot.lane.b32.xlu0 %v1409_v34, %s1209_s24  ;;  %v135_v38 = vpop.permute.xlu1 %134 }
  0x89   :  { %v133_v39 = vpop.permute.xlu0 %132  ;;  %v1423_v40 = vmax.f32 %v113_v36, %v135_v38  ;;  %v1427_v41 = vsel %vm689_vm2, %v71_v18, %v135_v38  ;;  %v1501_v18 = vld [vmem:[%s2315_s1 + $0x18] sm:$0x1] }
  0x8a   :  { %v1429_v42 = vmax.f32 %v112_v37, %v133_v39  ;;  %v1433_v43 = vsel %vm688_vm3, %v69_v16, %v133_v39  ;;  %2395 = vst [vmem:[#allocation9_spill] sm:$0xff] %v1501_v18  ;;  %vm687_vm8 = vcmp.eq.s32.totalorder %v1501_v18, 1  ;;  %v1541_v37 = vld [vmem:[%s2315_s1 + $0x68] sm:$0xff] }
  0x8b   :  { %262 = vrot.lane.b32.xlu1 %v1423_v40, %s1209_s24  ;;  %2401 = vst [vmem:[#allocation15_spill] sm:$0xff] %v1541_v37  ;;  %vm697_vm11 = vcmp.eq.s32.totalorder %v1541_v37, 1 }
  0x8c   :  { %260 = vrot.lane.b32.xlu0 %v1429_v42, %s1209_s24  ;;  %v1439_v44 = vpop.permute.xlu1 %74 }
  0x8d   :  { %v67_v45 = vpop.permute.xlu0 %66 }
  0x8e   :  { %v111_v36 = vmax.f32 %v1305_v9, %v67_v45 }
  0x90   :  { %v1446_v47 = vpop.permute.xlu1 %84 }
  0x91   :  { %v81_v48 = vpop.permute.xlu0 %80 }
  0x94   :  { %v129_v51 = vpop.permute.xlu1 %128 }
  0x95   :  { %v1455_v52 = vpop.permute.xlu0 %86  ;;  %v1462_v54 = vmax.f32 %v110_v49, %v129_v51  ;;  %v1466_v55 = vsel %vm686_vm4, %v65_v21, %v129_v51  ;;  %v1546_v49 = vld [vmem:[%s2315_s1 + $0x60] sm:$0xff] }
  0x96   :  { %2391 = vst [vmem:[#allocation5_spill] sm:$0xff] %v1466_v55  ;;  %2402 = vst [vmem:[#allocation16_spill] sm:$0xff] %v1546_v49  ;;  %vm2326_vm12 = vcmp.eq.s32.totalorder %v1546_v49, 1 }
  0x97   :  { %256 = vrot.lane.b32.xlu0 %v1462_v54, %s1209_s24 }
  0x98   :  { %v141_v58 = vpop.permute.xlu1 %140 }
  0x99   :  { %v137_v59 = vpop.permute.xlu0 %136  ;;  %v1479_v61 = vmax.f32 %v116_v57, %v141_v58  ;;  %v1483_v62 = vsel %vm692_vm5, %v77_v25, %v141_v58  ;;  %v115_v57 = vmax.f32 %v1300_v8, %v1439_v44  ;;  %v118_v58 = vmax.f32 %v1319_v11, %v81_v48 }
  0x9a   :  { %2393 = vst [vmem:[#allocation7_spill] sm:$0xff] %v1483_v62  ;;  %v1485_v63 = vmax.f32 %v114_v56, %v137_v59  ;;  %v1489_v16 = vsel %vm690_vm6, %v73_v20, %v137_v59  ;;  %v1571_v59 = vld [vmem:[%s2315_s1 + $0x58] sm:$0x1] }
  0x9b   :  { %2392 = vst [vmem:[#allocation6_spill] sm:$0xff] %v1479_v61  ;;  %2394 = vst [vmem:[#allocation8_spill] sm:$0xff] %v1489_v16  ;;  %268 = vrot.lane.b32.xlu0 %v1479_v61, %s1209_s24  ;;  %vm2325_vm13 = vcmp.eq.s32.totalorder %v1571_v59, 1 }
  0x9c   :  { %264 = vrot.lane.b32.xlu1 %v1485_v63, %s1209_s24  ;;  %v83_v19 = vpop.permute.xlu1 %82  ;;  %2405 = vst [vmem:[#allocation19_spill] sm:$0xff] %v1571_v59 }
  0x9d   :  { %v143_v21 = vpop.permute.xlu0 %142 }
  0x9e   :  { %v1503_v20 = vmax.f32 %v117_v17, %v143_v21  ;;  %v1508_v25 = vsel %vm693_vm7, %v1387_v24, %v143_v21  ;;  %v1525_v24 = vld [vmem:[%s2315_s1 + $0x38] sm:$0x1] }
  0x9f   :  { %2396 = vst [vmem:[#allocation10_spill] sm:$0xff] %v1508_v25  ;;  %348 = vrot.lane.b32.xlu0 %v1409_v34, %s1210_s8  ;;  %2399 = vst [vmem:[#allocation13_spill] sm:$0xff] %v1525_v24  ;;  %vm691_vm10 = vcmp.eq.s32.totalorder %v1525_v24, 1 }
  0xa0   :  { %270 = vrot.lane.b32.xlu1 %v1503_v20, %s1209_s24  ;;  %v131_v27 = vpop.permute.xlu1 %130 }
  0xa1   :  { %v1520_v29 = vpop.permute.xlu0 %88  ;;  %v1529_v30 = vsel %vm687_vm8, %v67_v45, %v131_v27  ;;  %v1548_v45 = vmax.f32 %v111_v36, %v131_v27 }
  0xa2   :  { %2398 = vst [vmem:[#allocation12_spill] sm:$0xff] %v1520_v29  ;;  %2400 = vst [vmem:[#allocation14_spill] sm:$0xff] %v1529_v30 }
  0xa3   :  { %356 = vrot.lane.b32.xlu0 %v1429_v42, %s1210_s8 }
  0xa4   :  { %350 = vrot.lane.b32.xlu1 %v1403_v32, %s1210_s8  ;;  %v145_v38 = vpop.permute.xlu1 %144 }
  0xa5   :  { %v139_v39 = vpop.permute.xlu0 %138  ;;  %v1552_v51 = vsel %vm694_vm9, %v81_v48, %v145_v38  ;;  %v1573_v27 = vmax.f32 %v118_v58, %v145_v38  ;;  %v121_v38 = vmax.f32 %v1328_v12, %v1455_v52 }
  0xa6   :  { %2403 = vst [vmem:[#allocation17_spill] sm:$0xff] %v1552_v51  ;;  %v1557_v56 = vsel %vm691_vm10, %v1439_v44, %v139_v39  ;;  %v1575_v44 = vmax.f32 %v115_v57, %v139_v39 }
  0xa7   :  { %2404 = vst [vmem:[#allocation18_spill] sm:$0xff] %v1557_v56  ;;  %258 = vrot.lane.b32.xlu0 %v1548_v45, %s1209_s24  ;;  %2406 = vst [vmem:[#allocation20_spill] sm:$0xff] %v1573_v27  ;;  %v120_v56 = vmax.f32 %v1314_v10, %v1446_v47 }
  0xa8   :  { %358 = vrot.lane.b32.xlu1 %v1423_v40, %s1210_s8  ;;  %v151_v17 = vpop.permute.xlu1 %150  ;;  %2407 = vst [vmem:[#allocation21_spill] sm:$0xff] %v1575_v44 }
  0xa9   :  { %v149_v21 = vpop.permute.xlu0 %148  ;;  %v1580_v48 = vsel %vm697_vm11, %v1455_v52, %v151_v17  ;;  %v1596_v57 = vmax.f32 %v121_v38, %v151_v17  ;;  %v122_v17 = vmax.f32 %v1350_v14, %v1520_v29 }
  0xaa   :  { %2408 = vst [vmem:[#allocation22_spill] sm:$0xff] %v1580_v48  ;;  %v1585_v36 = vsel %vm2326_vm12, %v1446_v47, %v149_v21  ;;  %v1598_v58 = vmax.f32 %v120_v56, %v149_v21  ;;  %v119_v56 = vmax.f32 %v1341_v13, %v83_v19  ;;  %vm652_vm12 = vcmp.ne.s32.totalorder %v1385_v23, 4294967196 }
  0xab   :  { %2409 = vst [vmem:[#allocation23_spill] sm:$0xff] %v1585_v36  ;;  %272 = vrot.lane.b32.xlu0 %v1573_v27, %s1209_s24  ;;  %2410 = vst [vmem:[#allocation24_spill] sm:$0xff] %v1596_v57 }
  0xac   :  { %266 = vrot.lane.b32.xlu1 %v1575_v44, %s1209_s24  ;;  %v147_v39 = vpop.permute.xlu1 %146  ;;  %2411 = vst [vmem:[#allocation25_spill] sm:$0xff] %v1598_v58 }
  0xad   :  { %v1602_v36 = vsel %vm2325_vm13, %v83_v19, %v147_v39  ;;  %v1608_v47 = vpop.permute.xlu0 %90  ;;  %v1623_v21 = vmax.f32 %v119_v56, %v147_v39  ;;  %vm2327_vm13 = vcmp.eq.s32.totalorder %v1385_v23, 0 }
  0xae   :  { %2412 = vst [vmem:[#allocation26_spill] sm:$0xff] %v1602_v36  ;;  %2413 = vst [vmem:[#allocation27_spill] sm:$0xff] %v1608_v47  ;;  %v123_v19 = vmax.f32 %v1367_v15, %v1608_v47 }
  0xaf   :  { %278 = vrot.lane.b32.xlu0 %v1596_v57, %s1209_s24 }
  0xb0   :  { %276 = vrot.lane.b32.xlu1 %v1598_v58, %s1209_s24  ;;  %v1642_v39 = vpop.permute.xlu1 %154 }
  0xb1   :  { %v1614_v52 = vpop.permute.xlu0 %152  ;;  %2416 = vst [vmem:[#allocation30_spill] sm:$0xff] %v1642_v39  ;;  %v1645_v56 = vmax.f32 %v123_v19, %v1642_v39 }
  0xb2   :  { %2414 = vst [vmem:[#allocation28_spill] sm:$0xff] %v1614_v52  ;;  %v1626_v38 = vmax.f32 %v122_v17, %v1614_v52 }
  0xb3   :  { %360 = vrot.lane.b32.xlu0 %v1485_v63, %s1210_s8  ;;  %2417 = vst [vmem:[#allocation31_spill] sm:$0xff] %v1645_v56 }
  0xb4   :  { %352 = vrot.lane.b32.xlu1 %v1462_v54, %s1210_s8  ;;  %2415 = vst [vmem:[#allocation29_spill] sm:$0xff] %v1626_v38 }
  0xb7   :  { %366 = vrot.lane.b32.xlu0 %v1503_v20, %s1210_s8 }
  0xb8   :  { %364 = vrot.lane.b32.xlu1 %v1479_v61, %s1210_s8 }
  0xbb   :  { %280 = vrot.lane.b32.xlu0 %v1626_v38, %s1209_s24 }
  0xbc   :  { %274 = vrot.lane.b32.xlu1 %v1623_v21, %s1209_s24 }
  0xbf   :  { %362 = vrot.lane.b32.xlu0 %v1575_v44, %s1210_s8 }
  0xc0   :  { %354 = vrot.lane.b32.xlu1 %v1548_v45, %s1210_s8 }
  0xc3   :  { %372 = vrot.lane.b32.xlu0 %v1598_v58, %s1210_s8 }
  0xc4   :  { %368 = vrot.lane.b32.xlu1 %v1573_v27, %s1210_s8 }
  0xc7   :  { %282 = vrot.lane.b32.xlu0 %v1645_v56, %s1209_s24  ;;  %s1216_s24 = smov 1.0  }
  0xc8   :  { %374 = vrot.lane.b32.xlu1 %v1596_v57, %s1210_s8 }
  0xcb   :  { %376 = vrot.lane.b32.xlu0 %v1626_v38, %s1210_s8 }
  0xcc   :  { %370 = vrot.lane.b32.xlu1 %v1623_v21, %s1210_s8 }
  0xd0   :  { %378 = vrot.lane.b32.xlu1 %v1645_v56, %s1210_s8 }
  0xf9   :  { %v255_v17 = vpop.permute.xlu1 %254 }
  0xfa   :  { %v253_v47 = vpop.permute.xlu0 %252  ;;  %v301_v19 = vsub.f32 %v1255_v3, %v255_v17 }
  0xfb   :  { %v300_v39 = vsub.f32 %v1241_v1, %v253_v47 }
  0xfc   :  { %v318_v36 = vmul.f32 1.442695, %v301_v19 }
  0xfd   :  { %v316_v29 = vmul.f32 1.442695, %v300_v39  ;;  %v263_v52 = vpop.permute.xlu1 %262 }
  0xfe   :  { %1029 = vpow2.f32 %v318_v36  ;;  %v305_v48 = vsub.f32 %v1250_v2, %v263_v52  ;;  %v261_v51 = vpop.permute.xlu0 %260 }
  0xff   :  { %1031 = vpow2.f32 %v316_v29  ;;  %v304_v30 = vsub.f32 %v1236_v0, %v261_v51 }
 0x100   :  { %v326_v25 = vmul.f32 1.442695, %v305_v48 }
 0x101   :  { %v324_v16 = vmul.f32 1.442695, %v304_v30 }
 0x102   :  { %1033 = vpow2.f32 %v326_v25 }
 0x103   :  { %1035 = vpow2.f32 %v324_v16 }
 0x108   :  { %v1030_v62 = vpop.eup %1029 }
 0x109   :  { %v1032_v55 = vpop.eup %1031  ;;  %462 = vrot.lane.b32.xlu1 %v1030_v62, %s1207_s13  ;;  %v257_v17 = vpop.permute.xlu0 %256 }
 0x10a   :  { %460 = vrot.lane.b32.xlu0 %v1032_v55, %s1207_s13  ;;  %v302_v47 = vsub.f32 %v1269_v5, %v257_v17 }
 0x10c   :  { %v1034_v36 = vpop.eup %1033  ;;  %v320_v39 = vmul.f32 1.442695, %v302_v47 }
 0x10d   :  { %v1036_v52 = vpop.eup %1035  ;;  %470 = vrot.lane.b32.xlu1 %v1034_v36, %s1207_s13  ;;  %v269_v29 = vpop.permute.xlu0 %268 }
 0x10e   :  { %v265_v19 = vpop.permute.xlu1 %264  ;;  %1037 = vpow2.f32 %v320_v39  ;;  %468 = vrot.lane.b32.xlu0 %v1036_v52, %s1207_s13  ;;  %v308_v16 = vsub.f32 %v1283_v7, %v269_v29 }
 0x10f   :  { %v306_v25 = vsub.f32 %v1264_v4, %v265_v19 }
 0x110   :  { %v332_v30 = vmul.f32 1.442695, %v308_v16 }
 0x111   :  { %v328_v62 = vmul.f32 1.442695, %v306_v25  ;;  %v349_v55 = vpop.permute.xlu0 %348 }
 0x112   :  { %v271_v51 = vpop.permute.xlu1 %270  ;;  %v396_v17 = vsub.f32 %v1241_v1, %v349_v55 }
 0x113   :  { %1039 = vpow2.f32 %v328_v62  ;;  %v309_v48 = vsub.f32 %v1278_v6, %v271_v51 }
 0x114   :  { %1041 = vpow2.f32 %v332_v30  ;;  %v412_v36 = vmul.f32 1.442695, %v396_v17 }
 0x115   :  { %v334_v47 = vmul.f32 1.442695, %v309_v48  ;;  %v357_v39 = vpop.permute.xlu0 %356 }
 0x116   :  { %v351_v56 = vpop.permute.xlu1 %350  ;;  %v400_v52 = vsub.f32 %v1236_v0, %v357_v39 }
 0x117   :  { %1043 = vpow2.f32 %v334_v47  ;;  %v397_v19 = vsub.f32 %v1255_v3, %v351_v56 }
 0x118   :  { %1045 = vpow2.f32 %v412_v36  ;;  %v1038_v29 = vpop.eup %1037  ;;  %v420_v16 = vmul.f32 1.442695, %v400_v52 }
 0x119   :  { %v414_v25 = vmul.f32 1.442695, %v397_v19  ;;  %464 = vrot.lane.b32.xlu0 %v1038_v29, %s1207_s13  ;;  %v259_v62 = vpop.permute.xlu0 %258 }
 0x11a   :  { %v359_v38 = vpop.permute.xlu1 %358  ;;  %v303_v30 = vsub.f32 %v1305_v9, %v259_v62 }
 0x11b   :  { %1047 = vpow2.f32 %v414_v25  ;;  %v401_v1 = vsub.f32 %v1250_v2, %v359_v38 }
 0x11c   :  { %1049 = vpow2.f32 %v420_v16  ;;  %v322_v48 = vmul.f32 1.442695, %v303_v30 }
 0x11d   :  { %v1040_v51 = vpop.eup %1039  ;;  %v422_v55 = vmul.f32 1.442695, %v401_v1  ;;  %v273_v0 = vpop.permute.xlu0 %272 }
 0x11e   :  { %v1042_v56 = vpop.eup %1041  ;;  %v267_v17 = vpop.permute.xlu1 %266  ;;  %472 = vrot.lane.b32.xlu1 %v1040_v51, %s1207_s13  ;;  %v310_v36 = vsub.f32 %v1319_v11, %v273_v0 }
 0x11f   :  { %1051 = vpow2.f32 %v422_v55  ;;  %v307_v47 = vsub.f32 %v1300_v8, %v267_v17  ;;  %476 = vrot.lane.b32.xlu0 %v1042_v56, %s1207_s13 }
 0x120   :  { %1053 = vpow2.f32 %v322_v48  ;;  %v336_v39 = vmul.f32 1.442695, %v310_v36 }
 0x121   :  { %v1044_v2 = vpop.eup %1043  ;;  %v330_v38 = vmul.f32 1.442695, %v307_v47  ;;  %v279_v29 = vpop.permute.xlu0 %278 }
 0x122   :  { %v1046_v19 = vpop.eup %1045  ;;  %v277_v52 = vpop.permute.xlu1 %276  ;;  %478 = vrot.lane.b32.xlu1 %v1044_v2, %s1207_s13  ;;  %v313_v16 = vsub.f32 %v1328_v12, %v279_v29 }
 0x123   :  { %1055 = vpow2.f32 %v330_v38  ;;  %v312_v25 = vsub.f32 %v1314_v10, %v277_v52  ;;  %540 = vrot.lane.b32.xlu0 %v1046_v19, %s1208_s26 }
 0x124   :  { %1057 = vpow2.f32 %v336_v39  ;;  %v342_v30 = vmul.f32 1.442695, %v313_v16 }
 0x125   :  { %v1048_v62 = vpop.eup %1047  ;;  %v340_v1 = vmul.f32 1.442695, %v312_v25  ;;  %v361_v48 = vpop.permute.xlu0 %360 }
 0x126   :  { %v1050_v51 = vpop.eup %1049  ;;  %v353_v55 = vpop.permute.xlu1 %352  ;;  %542 = vrot.lane.b32.xlu1 %v1048_v62, %s1208_s26  ;;  %v402_v17 = vsub.f32 %v1264_v4, %v361_v48 }
 0x127   :  { %1059 = vpow2.f32 %v340_v1  ;;  %v398_v56 = vsub.f32 %v1269_v5, %v353_v55  ;;  %548 = vrot.lane.b32.xlu0 %v1050_v51, %s1208_s26 }
 0x128   :  { %1061 = vpow2.f32 %v342_v30  ;;  %v424_v36 = vmul.f32 1.442695, %v402_v17  ;;  %v1211_v17 = vmov 4.0  }
 0x129   :  { %v1052_v0 = vpop.eup %1051  ;;  %v416_v47 = vmul.f32 1.442695, %v398_v56  ;;  %v367_v39 = vpop.permute.xlu0 %366 }
 0x12a   :  { %v1054_v2 = vpop.eup %1053  ;;  %v365_v38 = vpop.permute.xlu1 %364  ;;  %550 = vrot.lane.b32.xlu1 %v1052_v0, %s1208_s26  ;;  %v405_v5 = vsub.f32 %v1278_v6, %v367_v39  ;;  %v764_v0 = vsel %vm684_vm1, 2.0, %v1211_v17  ;;  %v765_v39 = vsel %vm685_vm0, 2.0, %v1211_v17  ;;  %vm672_vm1 = vcmp.eq.s32.totalorder %v1401_v31, 0 }
 0x12b   :  { %1063 = vpow2.f32 %v416_v47  ;;  %v404_v19 = vsub.f32 %v1283_v7, %v365_v38  ;;  %466 = vrot.lane.b32.xlu0 %v1054_v2, %s1207_s13  ;;  %v768_v2 = vsel %vm688_vm3, 2.0, %v1211_v17  ;;  %vm2328_vm3 = vcmp.ne.s32.totalorder %v1401_v31, 4294967196 }
 0x12c   :  { %1065 = vpow2.f32 %v424_v36  ;;  %v430_v4 = vmul.f32 1.442695, %v405_v5  ;;  %vm2329_vm0 = vcmp.ne.s32.totalorder %v1380_v22, 4294967196 }
 0x12d   :  { %v1056_v52 = vpop.eup %1055  ;;  %v428_v29 = vmul.f32 1.442695, %v404_v19  ;;  %v281_v62 = vpop.permute.xlu0 %280 }
 0x12e   :  { %v1058_v25 = vpop.eup %1057  ;;  %v275_v16 = vpop.permute.xlu1 %274  ;;  %474 = vrot.lane.b32.xlu1 %v1056_v52, %s1207_s13  ;;  %v314_v7 = vsub.f32 %v1350_v14, %v281_v62  ;;  %v769_v52 = vsel %vm689_vm2, 2.0, %v1211_v17  ;;  %vm673_vm2 = vcmp.eq.s32.totalorder %v1396_v28, 0 }
 0x12f   :  { %1067 = vpow2.f32 %v428_v29  ;;  %v311_v1 = vsub.f32 %v1341_v13, %v275_v16  ;;  %480 = vrot.lane.b32.xlu0 %v1058_v25, %s1207_s13  ;;  %v784_v25 = vsel %vm672_vm1, 1.0, %v768_v2 }
 0x130   :  { %1069 = vpow2.f32 %v430_v4  ;;  %v344_v6 = vmul.f32 1.442695, %v314_v7 }
 0x131   :  { %v1060_v30 = vpop.eup %1059  ;;  %v338_v51 = vmul.f32 1.442695, %v311_v1  ;;  %v363_v56 = vpop.permute.xlu0 %362  ;;  %v781_v1 = vsel %vm669_vm15, 1.0, %v765_v39 }
 0x132   :  { %v1062_v55 = vpop.eup %1061  ;;  %v355_v48 = vpop.permute.xlu1 %354  ;;  %484 = vrot.lane.b32.xlu1 %v1060_v30, %s1207_s13  ;;  %v403_v36 = vsub.f32 %v1300_v8, %v363_v56  ;;  %v780_v8 = vsel %vm2327_vm13, 1.0, %v764_v0  ;;  %vm657_vm13 = vcmp.ne.s32.totalorder %v1396_v28, 4294967196  ;;  %v772_v30 = vsel %vm692_vm5, 2.0, %v1211_v17 }
 0x133   :  { %1071 = vpow2.f32 %v338_v51  ;;  %v399_v47 = vsub.f32 %v1305_v9, %v355_v48  ;;  %486 = vrot.lane.b32.xlu0 %v1062_v55, %s1207_s13  ;;  %v785_v55 = vsel %vm673_vm2, 1.0, %v769_v52  ;;  %v1740_v48 = vsel %vm2328_vm3, %v784_v25, 0.0 }
 0x134   :  { %1073 = vpow2.f32 %v344_v6  ;;  %v426_v19 = vmul.f32 1.442695, %v403_v36  ;;  %v766_v56 = vsel %vm686_vm4, 2.0, %v1211_v17  ;;  %vm2331_vm5 = vcmp.eq.s32.totalorder %v1453_v50, 0 }
 0x135   :  { %v1064_v38 = vpop.eup %1063  ;;  %v418_v9 = vmul.f32 1.442695, %v399_v47  ;;  %v373_v4 = vpop.permute.xlu0 %372  ;;  %vm2330_vm3 = vcmp.ne.s32.totalorder %v1453_v50, 4294967196  ;;  %v788_v39 = vsel %vm2331_vm5, 1.0, %v772_v30  ;;  %vm670_vm4 = vcmp.eq.s32.totalorder %v1444_v46, 0 }
 0x136   :  { %v1066_v5 = vpop.eup %1065  ;;  %v369_v29 = vpop.permute.xlu1 %368  ;;  %544 = vrot.lane.b32.xlu1 %v1064_v38, %s1208_s26  ;;  %v408_v62 = vsub.f32 %v1314_v10, %v373_v4  ;;  %v1734_v10 = vsel %vm652_vm12, %v780_v8, 0.0  ;;  %v1752_v38 = vsel %vm2329_vm0, %v781_v1, 0.0  ;;  %vm2332_vm0 = vcmp.ne.s32.totalorder %v1444_v46, 4294967196 }
 0x137   :  { %1075 = vpow2.f32 %v418_v9  ;;  %v406_v16 = vsub.f32 %v1319_v11, %v369_v29  ;;  %552 = vrot.lane.b32.xlu0 %v1066_v5, %s1208_s26  ;;  %v858_v52 = vsel %vm828_vm14, %v1734_v10, 0.0  ;;  %v859_v29 = vsel %vm828_vm14, %v1740_v48, 0.0 }
 0x138   :  { %1077 = vpow2.f32 %v426_v19  ;;  %v436_v51 = vmul.f32 1.442695, %v408_v62  ;;  %v1759_v19 = vsel %vm657_vm13, %v785_v55, 0.0  ;;  %v782_v4 = vsel %vm670_vm4, 1.0, %v766_v56 }
 0x139   :  { %v1068_v7 = vpop.eup %1067  ;;  %v432_v11 = vmul.f32 1.442695, %v406_v16  ;;  %v283_v47 = vpop.permute.xlu0 %282  ;;  %v1772_v62 = vsel %vm2330_vm3, %v788_v39, 0.0  ;;  %v865_v30 = vsel %vm828_vm14, %v1752_v38, 0.0  ;;  %v860_v55 = vadd.f32 %v859_v29, %v858_v52 }
 0x13a   :  { %v1070_v6 = vpop.eup %1069  ;;  %v375_v0 = vpop.permute.xlu1 %374  ;;  %556 = vrot.lane.b32.xlu1 %v1068_v7, %s1208_s26  ;;  %v315_v2 = vsub.f32 %v1367_v15, %v283_v47  ;;  %2418 = vst [vmem:[#allocation32_spill] sm:$0xff] %v1772_v62  ;;  %v1789_v47 = vsel %vm2332_vm0, %v782_v4, 0.0  ;;  %vm2337_vm3 = vcmp.eq.s32.totalorder %v1460_v53, 0  ;;  %vm2335_vm5 = vcmp.ne.s32.totalorder %v1460_v53, 4294967196 }
 0x13b   :  { %1079 = vpow2.f32 %v432_v11  ;;  %v409_v36 = vsub.f32 %v1328_v12, %v375_v0  ;;  %558 = vrot.lane.b32.xlu0 %v1070_v6, %s1208_s26  ;;  %v866_v11 = vsel %vm828_vm14, %v1759_v19, 0.0  ;;  %2419 = vst [vmem:[#allocation33_spill] sm:$0xff] %v1789_v47  ;;  %vm2341_vm0 = vcmp.ne.s32.totalorder %v1501_v18, 4294967196 }
 0x13c   :  { %1081 = vpow2.f32 %v436_v51  ;;  %v346_v5 = vmul.f32 1.442695, %v315_v2  ;;  %v770_v51 = vsel %vm690_vm6, 2.0, %v1211_v17  ;;  %vm2336_vm6 = vcmp.eq.s32.totalorder %v1477_v60, 0 }
 0x13d   :  { %v1072_v9 = vpop.eup %1071  ;;  %v438_v12 = vmul.f32 1.442695, %v409_v36  ;;  %v377_v16 = vpop.permute.xlu0 %376  ;;  %v861_v36 = vsel %vm828_vm14, %v1772_v62, 0.0  ;;  %v786_v39 = vsel %vm2337_vm3, 1.0, %v770_v51  ;;  %v867_v4 = vadd.f32 %v866_v11, %v865_v30 }
 0x13e   :  { %v1074_v8 = vpop.eup %1073  ;;  %v371_v25 = vpop.permute.xlu1 %370  ;;  %482 = vrot.lane.b32.xlu1 %v1072_v9, %s1207_s13  ;;  %v410_v7 = vsub.f32 %v1350_v14, %v377_v16  ;;  %v1813_v16 = vsel %vm2335_vm5, %v786_v39, 0.0  ;;  %v771_v11 = vsel %vm691_vm10, 2.0, %v1211_v17  ;;  %v777_v51 = vsel %vm697_vm11, 2.0, %v1211_v17 }
 0x13f   :  { %1083 = vpow2.f32 %v438_v12  ;;  %v407_v1 = vsub.f32 %v1341_v13, %v371_v25  ;;  %488 = vrot.lane.b32.xlu0 %v1074_v8, %s1207_s13  ;;  %v773_v13 = vsel %vm693_vm7, 2.0, %v1211_v17  ;;  %vm2333_vm7 = vcmp.ne.s32.totalorder %v1477_v60, 4294967196  ;;  %2420 = vst [vmem:[#allocation34_spill] sm:$0xff] %v1813_v16 }
 0x140   :  { %1085 = vpow2.f32 %v346_v5  ;;  %v440_v0 = vmul.f32 1.442695, %v410_v7  ;;  %v789_v12 = vsel %vm2336_vm6, 1.0, %v773_v13  ;;  %v767_v8 = vsel %vm687_vm8, 2.0, %v1211_v17 }
 0x141   :  { %v1076_v6 = vpop.eup %1075  ;;  %v434_v56 = vmul.f32 1.442695, %v407_v1  ;;  %v872_v25 = vsel %vm828_vm14, %v1789_v47, 0.0  ;;  %v1818_v1 = vsel %vm2333_vm7, %v789_v12, 0.0  ;;  %vm2334_vm8 = vcmp.eq.s32.totalorder %v1501_v18, 0 }
 0x142   :  { %v1078_v14 = vpop.eup %1077  ;;  %546 = vrot.lane.b32.xlu1 %v1076_v6, %s1208_s26  ;;  %v379_v2 = vpop.permute.xlu1 %378  ;;  %2421 = vst [vmem:[#allocation35_spill] sm:$0xff] %v1818_v1  ;;  %v774_v7 = vsel %vm694_vm9, 2.0, %v1211_v17  ;;  %v783_v30 = vsel %vm2334_vm8, 1.0, %v767_v8  ;;  %v1837_v6 = vld [vmem:[%s2315_s1 + $0x70] sm:$0xff]  ;;  %vm2342_vm9 = vcmp.ne.s32.totalorder %v1518_v26, 4294967196  ;;  %vm2338_vm7 = vcmp.eq.s32.totalorder %v1518_v26, 0 }
 0x143   :  { %1087 = vpow2.f32 %v434_v56  ;;  %v411_v9 = vsub.f32 %v1367_v15, %v379_v2  ;;  %554 = vrot.lane.b32.xlu0 %v1078_v14, %s1208_s26  ;;  %v1809_v15 = vadd.f32 %v861_v36, %v860_v55  ;;  %2422 = vst [vmem:[#allocation36_spill] sm:$0xff] %v1837_v6  ;;  %vm2340_vm8 = vcmp.eq.s32.totalorder %v1525_v24, 0 }
 0x144   :  { %1089 = vpow2.f32 %v440_v0  ;;  %vm2423_vm5 = vcmp.eq.s32.totalorder %v1546_v49, 1  ;;  %v790_v0 = vsel %vm2338_vm7, 1.0, %v774_v7  ;;  %vm2344_vm10 = vcmp.ne.s32.totalorder %v1525_v24, 4294967196 }
 0x145   :  { %v1080_v5 = vpop.eup %1079  ;;  %v442_v52 = vmul.f32 1.442695, %v411_v9  ;;  %v776_v13 = vsel %vm2423_vm5, 2.0, %v1211_v17  ;;  %vm2339_vm11 = vcmp.eq.s32.totalorder %v1541_v37, 0  ;;  %vm680_vm6 = vcmp.eq.s32.totalorder %v1546_v49, 0 }
 0x146   :  { %v1082_v29 = vpop.eup %1081  ;;  %560 = vrot.lane.b32.xlu1 %v1080_v5, %s1208_s26  ;;  %v787_v14 = vsel %vm2340_vm8, 1.0, %v771_v11  ;;  %vm2343_vm3 = vcmp.ne.s32.totalorder %v1541_v37, 4294967196  ;;  %v793_v36 = vsel %vm2339_vm11, 1.0, %v777_v51  ;;  %vm698_vm5 = vcmp.eq.s32.totalorder %v1837_v6, 1 }
 0x147   :  { %1091 = vpow2.f32 %v442_v52  ;;  %564 = vrot.lane.b32.xlu0 %v1082_v29, %s1208_s26  ;;  %v873_v2 = vsel %vm828_vm14, %v1813_v16, 0.0  ;;  %vm2345_vm7 = vcmp.ne.s32.totalorder %v1546_v49, 4294967196  ;;  %v792_v39 = vsel %vm680_vm6, 1.0, %v776_v13  ;;  %v1878_v29 = vld [vmem:[%s2315_s1 + $0x78] sm:$0x1]  ;;  %v2023_v49 = vld [vmem:[%s2314_s0 + $0x48] sm:$0xff] }
 0x148   :  { %v778_v9 = vsel %vm698_vm5, 2.0, %v1211_v17  ;;  %v868_v5 = vsel %vm828_vm14, %v1818_v1, 0.0  ;;  %v1870_v8 = vsel %vm2341_vm0, %v783_v30, 0.0  ;;  %vm850_vm11 = vcmask 0   ;;  %2426 = vst [vmem:[#allocation38_spill] sm:$0xff] %v1878_v29 }
 0x149   :  { %v1084_v55 = vpop.eup %1083  ;;  %2424 = vst [vmem:[#allocation37_spill] sm:$0xff] %v1870_v8  ;;  %vm2425_vm8 = vcmp.eq.s32.totalorder %v1571_v59, 1  ;;  %v1882_v11 = vsel %vm2342_vm9, %v790_v0, 0.0  ;;  %v1886_v51 = vsel %vm2344_vm10, %v787_v14, 0.0  ;;  %v1890_v30 = vsel %vm2343_vm3, %v793_v36, 0.0 }
 0x14a   :  { %v1086_v56 = vpop.eup %1085  ;;  %566 = vrot.lane.b32.xlu1 %v1084_v55, %s1208_s26  ;;  %v775_v52 = vsel %vm2425_vm8, 2.0, %v1211_v17  ;;  %2427 = vst [vmem:[#allocation39_spill] sm:$0xff] %v1882_v11  ;;  %2428 = vst [vmem:[#allocation40_spill] sm:$0xff] %v1886_v51  ;;  %vm682_vm8 = vcmp.eq.s32.totalorder %v1837_v6, 0  ;;  %v1896_v55 = vsel %vm2345_vm7, %v792_v39, 0.0  ;;  %vm679_vm0 = vcmp.eq.s32.totalorder %v1571_v59, 0 }
 0x14b   :  { %490 = vrot.lane.b32.xlu0 %v1086_v56, %s1207_s13  ;;  %2429 = vst [vmem:[#allocation41_spill] sm:$0xff] %v1890_v30  ;;  %2430 = vst [vmem:[#allocation42_spill] sm:$0xff] %v1896_v55  ;;  %vm2350_vm9 = vcmp.ne.s32.totalorder %v1837_v6, 4294967196  ;;  %v794_v13 = vsel %vm682_vm8, 1.0, %v778_v9  ;;  %v874_v56 = vadd.f32 %v873_v2, %v872_v25  ;;  %vm2353_vm3 = vcmp.ne.s32.totalorder %v1571_v59, 4294967196 }
 0x14c   :  { %v791_v0 = vsel %vm679_vm0, 1.0, %v775_v52  ;;  %vm2346_vm10 = vcmp.eq.s32.totalorder %v1878_v29, 1  ;;  %v869_v36 = vadd.f32 %v868_v5, %v867_v4  ;;  %v879_v39 = vsel %vm850_vm11, %v1870_v8, 0.0 }
 0x14d   :  { %v1088_v12 = vpop.eup %1087  ;;  %v779_v9 = vsel %vm2346_vm10, 2.0, %v1211_v17  ;;  %v880_v25 = vsel %vm850_vm11, %v1886_v51, 0.0  ;;  %v870_v2 = vsel %vm828_vm14, %v1890_v30, 0.0  ;;  %v863_v52 = vsel %vm828_vm14, %v1896_v55, 0.0 }
 0x14e   :  { %v1090_v7 = vpop.eup %1089  ;;  %562 = vrot.lane.b32.xlu1 %v1088_v12, %s1208_s26  ;;  %v875_v12 = vsel %vm828_vm14, %v1882_v11, 0.0  ;;  %v1922_v4 = vsel %vm2350_vm9, %v794_v13, 0.0  ;;  %v1927_v5 = vsel %vm2353_vm3, %v791_v0, 0.0  ;;  %vm2351_vm7 = vcmp.eq.s32.totalorder %v1878_v29, 0 }
 0x14f   :  { %568 = vrot.lane.b32.xlu0 %v1090_v7, %s1208_s26  ;;  %2431 = vst [vmem:[#allocation43_spill] sm:$0xff] %v1922_v4  ;;  %2432 = vst [vmem:[#allocation44_spill] sm:$0xff] %v1927_v5  ;;  %v876_v17 = vadd.f32 %v875_v12, %v874_v56  ;;  %vm2352_vm10 = vcmp.ne.s32.totalorder %v1878_v29, 4294967196  ;;  %v795_v7 = vsel %vm2351_vm7, 1.0, %v779_v9  ;;  %v881_v30 = vadd.f32 %v880_v25, %v879_v39  ;;  %v2000_v29 = vld [vmem:[%s2314_s0 + $0x10] sm:$0xff] }
 0x150   :  { %v1933_v55 = vadd.f32 %v870_v2, %v869_v36  ;;  %v1936_v13 = vadd.f32 %v863_v52, %v1809_v15  ;;  %v882_v0 = vsel %vm850_vm11, %v1927_v5, 0.0  ;;  %v1944_v56 = vsel %vm2352_vm10, %v795_v7, 0.0 }
 0x151   :  { %v1092_v14 = vpop.eup %1091  ;;  %2433 = vst [vmem:[#allocation45_spill] sm:$0xff] %v1944_v56  ;;  %v883_v11 = vadd.f32 %v882_v0, %v881_v30  ;;  %v884_v15 = vsel %vm850_vm11, %v1944_v56, 0.0  ;;  %v1212_v36 = vmov 0.0   ;;  %v197_v37 = vsub.f32 %v2023_v49, %v1503_v20 }
 0x152   :  { %570 = vrot.lane.b32.xlu1 %v1092_v14, %s1208_s26  ;;  %v877_v14 = vsel %vm828_vm14, %v1922_v4, 0.0  ;;  %vm886_vm9 = vcmp.gt.f32.partialorder %v1936_v13, 0.0  ;;  %vm887_vm7 = vcmp.gt.f32.partialorder %v1933_v55, 0.0 }
 0x153   :  { %v1946_v12 = vadd.f32 %v877_v14, %v876_v17  ;;  %v1008_v39 = vsel %vm886_vm9, 1.0, %v1212_v36  ;;  %v1009_v9 = vsel %vm887_vm7, 1.0, %v1212_v36  ;;  %v1956_v25 = vadd.f32 %v884_v15, %v883_v11 }
 0x154   :  { %v955_v30 = vsel %vm828_vm14, %v1008_v39, 0.0  ;;  %v956_v2 = vsel %vm828_vm14, %v1009_v9, 0.0  ;;  %v1971_v39 = vld [vmem:[%s2314_s0] sm:$0xff] }
 0x155   :  { %2434 = vst [vmem:[#allocation46_spill] sm:$0xff] %v1946_v12  ;;  %2435 = vst [vmem:[#allocation47_spill] sm:$0xff] %v1956_v25  ;;  %vm888_vm10 = vcmp.gt.f32.partialorder %v1946_v12, 0.0  ;;  %vm2384_vm3 = vcmp.gt.f32.partialorder %v1956_v25, 0.0  ;;  %v957_v17 = vadd.f32 %v956_v2, %v955_v30  ;;  %v188_v9 = vsub.f32 %v1971_v39, %v1409_v34  ;;  %v2016_v12 = vld [vmem:[%s2314_s0 + $0x40] sm:$0xff] }
 0x156   :  { %v1010_v52 = vsel %vm888_vm10, 1.0, %v1212_v36  ;;  %v1011_v14 = vsel %vm2384_vm3, 1.0, %v1212_v36  ;;  %v189_v30 = vsub.f32 %v1255_v3, %v1403_v32  ;;  %v1980_v36 = vld [vmem:[%s2314_s0 + $0x20] sm:$0xff]  ;;  %vm2438_vm3 = vcmp.eq.s32.totalorder %v1385_v23, 0 }
 0x157   :  { %v958_v7 = vsel %vm828_vm14, %v1010_v52, 0.0  ;;  %v960_v11 = vsel %vm850_vm11, %v1011_v14, 0.0  ;;  %v204_v2 = vmul.f32 1.442695, %v188_v9  ;;  %v192_v52 = vsub.f32 %v1980_v36, %v1429_v42  ;;  %v1987_v14 = vld [vmem:[%s2314_s0 + $0x28] sm:$0xff] }
 0x158   :  { %v959_v0 = vadd.f32 %v958_v7, %v957_v17  ;;  %v206_v7 = vmul.f32 1.442695, %v189_v30 }
 0x159   :  { %1093 = vpow2.f32 %v204_v2  ;;  %v190_v2 = vsub.f32 %v2000_v29, %v1462_v54 }
 0x15a   :  { %v961_v15 = vadd.f32 %v960_v11, %v959_v0  ;;  %v193_v0 = vsub.f32 %v1987_v14, %v1423_v40  ;;  %v212_v11 = vmul.f32 1.442695, %v192_v52  ;;  %1095 = vpow2.f32 %v206_v7 }
 0x15b   :  { %v208_v25 = vmul.f32 1.442695, %v190_v2 }
 0x15c   :  { %1097 = vpow2.f32 %v212_v11  ;;  %v2009_v11 = vld [vmem:[%s2314_s0 + $0x30] sm:$0xff] }
 0x163   :  { %v1094_v52 = vpop.eup %1093 }
 0x164   :  { %v1096_v8 = vpop.eup %1095 }
 0x166   :  { %v1098_v59 = vpop.eup %1097 }
 0x16e   :  { %962 = vadd.xlane.f32.xlu0 %v961_v15  ;;  %v214_v15 = vmul.f32 1.442695, %v193_v0 }
 0x170   :  { %1099 = vpow2.f32 %v214_v15  ;;  %v194_v15 = vsub.f32 %v2009_v11, %v1485_v63 }
 0x172   :  { %v216_v62 = vmul.f32 1.442695, %v194_v15 }
 0x17a   :  { %v1100_v26 = vpop.eup %1099 }
 0x17b   :  { %v463_v17 = vpop.permute.xlu1 %462 }
 0x17c   :  { %v461_v56 = vpop.permute.xlu0 %460  ;;  %v509_v6 = vadd.f32 %v1096_v8, %v463_v17  ;;  %v222_v8 = vmul.f32 1.442695, %v197_v37 }
 0x17d   :  { %v508_v7 = vadd.f32 %v1094_v52, %v461_v56  ;;  %v196_v56 = vsub.f32 %v2016_v12, %v1479_v61 }
 0x17f   :  { %v471_v9 = vpop.permute.xlu1 %470  ;;  %v220_v18 = vmul.f32 1.442695, %v196_v56 }
 0x180   :  { %v469_v3 = vpop.permute.xlu0 %468 }
 0x181   :  { %v512_v2 = vadd.f32 %v1098_v59, %v469_v3  ;;  %v2032_v59 = vld [vmem:[%s2314_s0 + $0x18] sm:$0x1] }
 0x18b   :  { %v1991_v4 = vpop.permute.xlu0 %464 }
 0x190   :  { %v1993_v5 = vpop.permute.xlu1 %472 }
 0x191   :  { %v1995_v30 = vpop.permute.xlu0 %476 }
 0x194   :  { %v2004_v0 = vpop.permute.xlu1 %478 }
 0x195   :  { %v541_v51 = vpop.permute.xlu0 %540 }
 0x196   :  { %v588_v52 = vadd.f32 %v541_v51, %v508_v7  ;;  %v513_v7 = vadd.f32 %v1100_v26, %v471_v9  ;;  %v2039_v26 = vld [vmem:[%s2314_s0 + $0x50] sm:$0xff] }
 0x198   :  { %1101 = vlog2.f32 %v588_v52  ;;  %v543_v1 = vpop.permute.xlu1 %542 }
 0x199   :  { %v589_v24 = vadd.f32 %v543_v1, %v509_v6  ;;  %v549_v16 = vpop.permute.xlu0 %548  ;;  %1103 = vpow2.f32 %v208_v25  ;;  %v191_v1 = vsub.f32 %v2032_v59, %v1548_v45 }
 0x19a   :  { %v592_v51 = vadd.f32 %v549_v16, %v512_v2  ;;  %v2055_v16 = vld [vmem:[%s2314_s0 + $0x68] sm:$0xff] }
 0x19b   :  { %1105 = vlog2.f32 %v589_v24  ;;  %v198_v24 = vsub.f32 %v2039_v26, %v1573_v27  ;;  %2436 = vst [vmem:[#allocation48_spill] sm:$0xff] %v2055_v16  ;;  %v201_v6 = vsub.f32 %v2055_v16, %v1596_v57  ;;  %v210_v3 = vmul.f32 1.442695, %v191_v1  ;;  %v1179_v1 = vld [vmem:[%s2314_s0 + $0x8] sm:$0xff] }
 0x19c   :  { %1107 = vlog2.f32 %v592_v51  ;;  %v551_v17 = vpop.permute.xlu1 %550  ;;  %v2065_v51 = vld [vmem:[%s2314_s0 + $0x60] sm:$0xff]  ;;  %v721_v27 = vsel %vm673_vm2, %v1987_v14, %v1427_v41  ;;  %vm2451_vm2 = vcmp.ne.s32.totalorder %v1444_v46, 4294967196 }
 0x19d   :  { %1109 = vpow2.f32 %v216_v62  ;;  %v593_v47 = vadd.f32 %v551_v17, %v513_v7  ;;  %v2027_v61 = vpop.permute.xlu0 %466  ;;  %v224_v9 = vmul.f32 1.442695, %v198_v24  ;;  %2437 = vst [vmem:[#allocation49_spill] sm:$0xff] %v2065_v51  ;;  %v200_v7 = vsub.f32 %v2065_v51, %v1598_v58  ;;  %v2456_v46 = vld [vmem:[#allocation9_spill] sm:$0xff] }
 0x19e   :  { %1111 = vpow2.f32 %v220_v18  ;;  %v2046_v18 = vld [vmem:[%s2314_s0 + $0x38] sm:$0x1]  ;;  %v717_v24 = vsel %vm669_vm15, %v1179_v1, %v1407_v33  ;;  %v720_v33 = vsel %vm672_vm1, %v1980_v36, %v1433_v43  ;;  %vm2441_vm15 = vcmp.ne.s32.totalorder %v1401_v31, 4294967196 }
 0x19f   :  { %1113 = vlog2.f32 %v593_v47  ;;  %v195_v37 = vsub.f32 %v2046_v18, %v1575_v44  ;;  %vm2448_vm1 = vcmp.eq.s32.totalorder %v1460_v53, 0 }
 0x1a0   :  { %1115 = vpow2.f32 %v222_v8  ;;  %v2050_v62 = vpop.permute.xlu1 %474 }
 0x1a1   :  { %v2059_v47 = vpop.permute.xlu0 %480  ;;  %v218_v52 = vmul.f32 1.442695, %v195_v37  ;;  %v716_v37 = vsel %vm2438_vm3, %v1971_v39, %v1413_v35  ;;  %1117 = vpow2.f32 %v210_v3  ;;  %vm2450_vm3 = vcmp.eq.s32.totalorder %v1477_v60, 0 }
 0x1a2   :  { %v1102_v25 = vpop.eup %1101  ;;  %1119 = vpow2.f32 %v224_v9 }
 0x1a3   :  { %v605_v15 = vmul.f32 0.6931472, %v1102_v25  ;;  %v1104_v56 = vpop.eup %1103  ;;  %v230_v25 = vmul.f32 1.442695, %v201_v6  ;;  %1121 = vpow2.f32 %v218_v52 }
 0x1a4   :  { %v2069_v8 = vpop.permute.xlu1 %484  ;;  %v510_v35 = vadd.f32 %v1104_v56, %v1991_v4 }
 0x1a5   :  { %v1106_v17 = vpop.eup %1105  ;;  %v636_v2 = vadd.f32 %v605_v15, %v1409_v34  ;;  %v2082_v57 = vpop.permute.xlu0 %486  ;;  %v228_v15 = vmul.f32 1.442695, %v200_v7  ;;  %1123 = vpow2.f32 %v230_v25 }
 0x1a6   :  { %v1108_v58 = vpop.eup %1107  ;;  %v607_v1 = vmul.f32 0.6931472, %v1106_v17 }
 0x1a7   :  { %v1110_v51 = vpop.eup %1109  ;;  %v732_v34 = vsub.f32 %v636_v2, %v716_v37  ;;  %v613_v39 = vmul.f32 0.6931472, %v1108_v58  ;;  %v2101_v58 = vld [vmem:[%s2314_s0 + $0x58] sm:$0x1] }
 0x1a8   :  { %v1112_v6 = vpop.eup %1111  ;;  %v514_v44 = vadd.f32 %v1110_v51, %v1993_v5  ;;  %v637_v41 = vadd.f32 %v607_v1, %v1403_v32  ;;  %v545_v14 = vpop.permute.xlu1 %544  ;;  %v199_v5 = vsub.f32 %v2101_v58, %v1623_v21 }
 0x1a9   :  { %v1114_v16 = vpop.eup %1113  ;;  %v748_v43 = vsel %vm652_vm12, %v732_v34, 0.0  ;;  %v640_v36 = vadd.f32 %v613_v39, %v1429_v42  ;;  %v590_v3 = vadd.f32 %v545_v14, %v510_v35  ;;  %v553_v9 = vpop.permute.xlu0 %552  ;;  %v516_v2 = vadd.f32 %v1112_v6, %v1995_v30  ;;  %v2440_v30 = vld [vmem:[#allocation29_spill] sm:$0xff] }
 0x1aa   :  { %v1116_v4 = vpop.eup %1115  ;;  %v733_v32 = vsub.f32 %v637_v41, %v717_v24  ;;  %v615_v56 = vmul.f32 0.6931472, %v1114_v16  ;;  %v594_v52 = vadd.f32 %v553_v9, %v514_v44  ;;  %v812_v42 = vmul.f32 %v1734_v10, %v748_v43  ;;  %v2114_v44 = vld [vmem:[%s2314_s0 + $0x70] sm:$0xff] }
 0x1ab   :  { %v517_v23 = vadd.f32 %v1116_v4, %v2004_v0  ;;  %v736_v51 = vsub.f32 %v640_v36, %v720_v33  ;;  %1125 = vlog2.f32 %v590_v3  ;;  %vm2439_vm12 = vcmp.ne.s32.totalorder %v1380_v22, 4294967196  ;;  %v2123_v22 = vld [vmem:[%s2314_s0 + $0x78] sm:$0x1]  ;;  %v1118_v6 = vpop.eup %1117 }
 0x1ac   :  { %v749_v7 = vsel %vm2439_vm12, %v733_v32, 0.0  ;;  %v641_v17 = vadd.f32 %v615_v56, %v1423_v40  ;;  %1127 = vlog2.f32 %v594_v52  ;;  %v557_v37 = vpop.permute.xlu1 %556  ;;  %v202_v0 = vsub.f32 %v2114_v44, %v2440_v30  ;;  %v2442_v40 = vld [vmem:[#allocation31_spill] sm:$0xff] }
 0x1ad   :  { %1129 = vpow2.f32 %v228_v15  ;;  %v752_v16 = vsel %vm2441_vm15, %v736_v51, 0.0  ;;  %v596_v10 = vadd.f32 %v557_v37, %v516_v2  ;;  %v559_v24 = vpop.permute.xlu0 %558  ;;  %v203_v25 = vsub.f32 %v2123_v22, %v2442_v40 }
 0x1ae   :  { %v816_v33 = vmul.f32 %v1740_v48, %v752_v16  ;;  %v737_v1 = vsub.f32 %v641_v17, %v721_v27  ;;  %v597_v35 = vadd.f32 %v559_v24, %v517_v23  ;;  %v890_v34 = vmax.f32 %v1936_v13, 1e-30  ;;  %v1120_v48 = vpop.eup %1119 }
 0x1af   :  { %v226_v39 = vmul.f32 1.442695, %v199_v5  ;;  %v813_v31 = vmul.f32 %v1752_v38, %v749_v7  ;;  %1131 = vlog2.f32 %v596_v10  ;;  %v829_v15 = vsel %vm828_vm14, %v812_v42, 0.0  ;;  %v1122_v38 = vpop.eup %1121 }
 0x1b0   :  { %v830_v41 = vsel %vm828_vm14, %v816_v33, 0.0  ;;  %v753_v14 = vsel %vm657_vm13, %v737_v1, 0.0  ;;  %1133 = vlog2.f32 %v597_v35  ;;  %v2134_v43 = vpop.permute.xlu1 %482  ;;  %v232_v27 = vmul.f32 1.442695, %v202_v0  ;;  %v1124_v32 = vpop.eup %1123  ;;  %v2444_v1 = vld [vmem:[#allocation5_spill] sm:$0xff] }
 0x1b1   :  { %v2136_v36 = vadd.f32 %v830_v41, %v829_v15  ;;  %v817_v3 = vmul.f32 %v1759_v19, %v753_v14  ;;  %v2139_v9 = vpop.permute.xlu0 %488  ;;  %v2443_v4 = vmax.f32 %v1933_v55, 1e-30  ;;  %v234_v5 = vmul.f32 1.442695, %v203_v25  ;;  %v2447_v15 = vld [vmem:[#allocation8_spill] sm:$0xff] }
 0x1b2   :  { %v836_v28 = vsel %vm828_vm14, %v813_v31, 0.0  ;;  %v511_v52 = vadd.f32 %v1118_v6, %v2027_v61  ;;  %v515_v19 = vadd.f32 %v1122_v38, %v2050_v62  ;;  %v518_v10 = vadd.f32 %v1120_v48, %v2059_v47 }
 0x1b3   :  { %1135 = vrcp.f32 %v2443_v4  ;;  %v837_v56 = vsel %vm828_vm14, %v817_v3, 0.0  ;;  %v718_v35 = vsel %vm670_vm4, %v2000_v29, %v2444_v1  ;;  %vm2446_vm13 = vcmp.eq.s32.totalorder %v1453_v50, 0 }
 0x1b4   :  { %1137 = vrcp.f32 %v890_v34  ;;  %v2146_v2 = vadd.f32 %v837_v56, %v836_v28  ;;  %v547_v23 = vpop.permute.xlu1 %546  ;;  %v2445_v34 = vld [vmem:[#allocation7_spill] sm:$0xff]  ;;  %v521_v29 = vadd.f32 %v1124_v32, %v2082_v57  ;;  %v2453_v57 = vld [vmem:[#allocation33_spill] sm:$0xff]  ;;  %vm2454_vm4 = vcmp.ne.s32.totalorder %v1460_v53, 4294967196 }
 0x1b5   :  { %1139 = vpow2.f32 %v226_v39  ;;  %v1126_v51 = vpop.eup %1125  ;;  %v591_v42 = vadd.f32 %v547_v23, %v511_v52  ;;  %v555_v7 = vpop.permute.xlu0 %554  ;;  %v724_v39 = vsel %vm2446_vm13, %v2016_v12, %v2445_v34  ;;  %v2449_v12 = vld [vmem:[#allocation10_spill] sm:$0xff]  ;;  %vm2457_vm12 = vcmp.eq.s32.totalorder %v2456_v46, 0 }
 0x1b6   :  { %1141 = vpow2.f32 %v232_v27  ;;  %v1128_v17 = vpop.eup %1127  ;;  %v609_v37 = vmul.f32 0.6931472, %v1126_v51  ;;  %v595_v0 = vadd.f32 %v555_v7, %v515_v19 }
 0x1b7   :  { %1143 = vpow2.f32 %v234_v5  ;;  %v1130_v16 = vpop.eup %1129  ;;  %v617_v24 = vmul.f32 0.6931472, %v1128_v17  ;;  %v2452_v5 = vld [vmem:[#allocation6_spill] sm:$0xff]  ;;  %v2458_v17 = vld [vmem:[#allocation17_spill] sm:$0xff] }
 0x1b8   :  { %1145 = vlog2.f32 %v591_v42  ;;  %v520_v61 = vadd.f32 %v1130_v16, %v2069_v8  ;;  %v638_v25 = vadd.f32 %v609_v37, %v1462_v54  ;;  %v561_v62 = vpop.permute.xlu1 %560  ;;  %v722_v54 = vsel %vm2448_vm1, %v2009_v11, %v2447_v15  ;;  %v2459_v37 = vld [vmem:[#allocation11_spill] sm:$0xff]  ;;  %v2461_v16 = vld [vmem:[#allocation34_spill] sm:$0xff] }
 0x1b9   :  { %1147 = vlog2.f32 %v595_v0  ;;  %v1132_v33 = vpop.eup %1131  ;;  %v642_v47 = vadd.f32 %v617_v24, %v1485_v63  ;;  %v598_v31 = vadd.f32 %v561_v62, %v518_v10  ;;  %v565_v6 = vpop.permute.xlu0 %564  ;;  %v725_v63 = vsel %vm2450_vm3, %v2023_v49, %v2449_v12  ;;  %v2455_v49 = vld [vmem:[#allocation14_spill] sm:$0xff] }
 0x1ba   :  { %v1134_v8 = vpop.eup %1133  ;;  %v734_v41 = vsub.f32 %v638_v25, %v718_v35  ;;  %v621_v14 = vmul.f32 0.6931472, %v1132_v33  ;;  %v600_v48 = vadd.f32 %v565_v6, %v520_v61  ;;  %v719_v7 = vsel %vm2457_vm12, %v2032_v59, %v2455_v49  ;;  %v2462_v33 = vld [vmem:[#allocation18_spill] sm:$0xff]  ;;  %v2463_v59 = vld [vmem:[#allocation13_spill] sm:$0xff]  ;;  %v2466_v6 = vld [vmem:[#allocation32_spill] sm:$0xff] }
 0x1bb   :  { %v738_v27 = vsub.f32 %v642_v47, %v722_v54  ;;  %v623_v3 = vmul.f32 0.6931472, %v1134_v8  ;;  %1149 = vlog2.f32 %v598_v31  ;;  %vm2460_vm15 = vcmp.eq.s32.totalorder %v2459_v37, 0  ;;  %v2475_v49 = vld [vmem:[#allocation49_spill] sm:$0xff] }
 0x1bc   :  { %v750_v4 = vsel %vm2451_vm2, %v734_v41, 0.0  ;;  %v644_v11 = vadd.f32 %v621_v14, %v2452_v5  ;;  %1151 = vlog2.f32 %v600_v48  ;;  %v567_v28 = vpop.permute.xlu1 %566  ;;  %v2189_v0 = vsel %vm2460_vm15, %v2039_v26, %v2458_v17  ;;  %v2476_v17 = vld [vmem:[#allocation16_spill] sm:$0xff] }
 0x1bd   :  { %v2166_v38 = vpop.eup %1135  ;;  %v814_v32 = vmul.f32 %v2453_v57, %v750_v4  ;;  %v754_v52 = vsel %vm2454_vm4, %v738_v27, 0.0  ;;  %v645_v19 = vadd.f32 %v623_v3, %v1503_v20  ;;  %v601_v23 = vadd.f32 %v567_v28, %v521_v29  ;;  %v491_v51 = vpop.permute.xlu0 %490  ;;  %v2470_v28 = vld [vmem:[#allocation48_spill] sm:$0xff]  ;;  %v2471_v57 = vld [vmem:[#allocation15_spill] sm:$0xff] }
 0x1be   :  { %v2175_v56 = vpop.eup %1137  ;;  %v818_v10 = vmul.f32 %v2461_v16, %v754_v52  ;;  %v740_v53 = vsub.f32 %v644_v11, %v724_v39  ;;  %vm2464_vm13 = vcmp.eq.s32.totalorder %v2463_v59, 0  ;;  %vm2465_vm1 = vcmp.ne.s32.totalorder %v1453_v50, 4294967196  ;;  %v2469_v11 = vld [vmem:[#allocation22_spill] sm:$0xff]  ;;  %v2477_v16 = vld [vmem:[#allocation28_spill] sm:$0xff] }
 0x1bf   :  { %v1140_v42 = vpop.eup %1139  ;;  %v843_v20 = vsel %vm828_vm14, %v814_v32, 0.0  ;;  %v741_v61 = vsub.f32 %v645_v19, %v725_v63  ;;  %1153 = vlog2.f32 %v601_v23  ;;  %v723_v1 = vsel %vm2464_vm13, %v2046_v18, %v2462_v33  ;;  %v2468_v18 = vld [vmem:[#allocation35_spill] sm:$0xff]  ;;  %v2473_v19 = vld [vmem:[#allocation21_spill] sm:$0xff]  ;;  %v2480_v33 = vld [vmem:[#allocation26_spill] sm:$0xff] }
 0x1c0   :  { %v1142_v24 = vpop.eup %1141  ;;  %v519_v25 = vadd.f32 %v1140_v42, %v2134_v43  ;;  %v844_v35 = vsel %vm828_vm14, %v818_v10, 0.0  ;;  %v756_v26 = vsel %vm2465_vm1, %v740_v53, 0.0  ;;  %v563_v39 = vpop.permute.xlu1 %562  ;;  %vm2467_vm3 = vcmp.ne.s32.totalorder %v1477_v60, 4294967196  ;;  %v2478_v10 = vld [vmem:[#allocation12_spill] sm:$0xff] }
 0x1c1   :  { %v1144_v62 = vpop.eup %1143  ;;  %v522_v34 = vadd.f32 %v1142_v24, %v2139_v9  ;;  %v2202_v31 = vadd.f32 %v844_v35, %v843_v20  ;;  %v820_v43 = vmul.f32 %v2466_v6, %v756_v26  ;;  %v757_v8 = vsel %vm2467_vm3, %v741_v61, 0.0  ;;  %v569_v54 = vpop.permute.xlu0 %568  ;;  %v2479_v53 = vld [vmem:[#allocation36_spill] sm:$0xff]  ;;  %v2481_v35 = vld [vmem:[#allocation19_spill] sm:$0xff] }
 0x1c2   :  { %v1146_v47 = vpop.eup %1145  ;;  %v599_v15 = vadd.f32 %v563_v39, %v519_v25  ;;  %v821_v14 = vmul.f32 %v2468_v18, %v757_v8  ;;  %v906_v50 = vlaneseq  ;;  %v523_v3 = vadd.f32 %v1144_v62, %v491_v51  ;;  %v2484_v6 = vld [vmem:[#allocation20_spill] sm:$0xff]  ;;  %v2488_v18 = vld [vmem:[#allocation25_spill] sm:$0xff] }
 0x1c3   :  { %v1148_v41 = vpop.eup %1147  ;;  %v611_v48 = vmul.f32 0.6931472, %v1146_v47  ;;  %v602_v29 = vadd.f32 %v569_v54, %v522_v34  ;;  %v832_v27 = vsel %vm828_vm14, %v820_v43, 0.0  ;;  %vm2472_vm2 = vcmp.eq.s32.totalorder %v2471_v57, 0  ;;  %v2482_v34 = vld [vmem:[#allocation46_spill] sm:$0xff]  ;;  %v2486_v54 = vld [vmem:[#allocation37_spill] sm:$0xff] }
 0x1c4   :  { %v619_v9 = vmul.f32 0.6931472, %v1148_v41  ;;  %1155 = vlog2.f32 %v599_v15  ;;  %v833_v12 = vadd.f32 %v832_v27, %v2136_v36  ;;  %v839_v63 = vsel %vm828_vm14, %v821_v14, 0.0  ;;  %v571_v4 = vpop.permute.xlu1 %570  ;;  %v2474_v36 = vld [vmem:[#allocation23_spill] sm:$0xff]  ;;  %v2490_v27 = vld [vmem:[#allocation30_spill] sm:$0xff] }
 0x1c5   :  { %v639_v60 = vadd.f32 %v611_v48, %v1548_v45  ;;  %1157 = vlog2.f32 %v602_v29  ;;  %v1150_v5 = vpop.eup %1149  ;;  %v729_v32 = vsel %vm2472_vm2, %v2470_v28, %v2469_v11  ;;  %v2217_v52 = vadd.f32 %v839_v63, %v2146_v2  ;;  %v2485_v15 = vld [vmem:[#allocation47_spill] sm:$0xff]  ;;  %v2489_v48 = vld [vmem:[#allocation40_spill] sm:$0xff] }
 0x1c6   :  { %v643_v23 = vadd.f32 %v619_v9, %v2473_v19  ;;  %v603_v51 = vadd.f32 %v571_v4, %v523_v3  ;;  %v1152_v42 = vpop.eup %1151  ;;  %v728_v45 = vsel %vm680_vm6, %v2475_v49, %v2474_v36  ;;  %v714_v24 = vsel %vm698_vm5, %v2478_v10, %v2477_v16  ;;  %v2491_v9 = vld [vmem:[#allocation27_spill] sm:$0xff]  ;;  %v2492_v3 = vld [vmem:[#allocation38_spill] sm:$0xff]  ;;  %v2495_v11 = vld [vmem:[#allocation24_spill] sm:$0xff] }
 0x1c7   :  { %v735_v20 = vsub.f32 %v639_v60, %v719_v7  ;;  %v625_v61 = vmul.f32 0.6931472, %v1150_v5  ;;  %v629_v62 = vmul.f32 0.6931472, %v1152_v42  ;;  %v907_v2 = vshrl.u32 %v906_v50, 7  ;;  %v2498_v49 = vld [vmem:[#allocation42_spill] sm:$0xff] }
 0x1c8   :  { %v739_v25 = vsub.f32 %v643_v23, %v723_v1  ;;  %1159 = vlog2.f32 %v603_v51  ;;  %v727_v26 = vsel %vm679_vm0, %v2101_v58, %v2480_v33  ;;  %v892_v39 = vmax.f32 %v2482_v34, 1e-30  ;;  %v2500_v33 = vld [vmem:[#allocation41_spill] sm:$0xff] }
 0x1c9   :  { %vm2483_vm6 = vcmp.ne.s32.totalorder %v2456_v46, 4294967196  ;;  %v646_v43 = vadd.f32 %v625_v61, %v2484_v6  ;;  %v1154_v8 = vpop.eup %1153  ;;  %v893_v7 = vmax.f32 %v2485_v15, 1e-30  ;;  %vm2487_vm5 = vcmp.ne.s32.totalorder %v2463_v59, 4294967196 }
 0x1ca   :  { %v751_v47 = vsel %vm2483_vm6, %v735_v20, 0.0  ;;  %v755_v41 = vsel %vm2487_vm5, %v739_v25, 0.0  ;;  %v648_v14 = vadd.f32 %v629_v62, %v2488_v18  ;;  %v730_v58 = vsel %vm682_vm8, %v2114_v44, %v714_v24 }
 0x1cb   :  { %v815_v1 = vmul.f32 %v2486_v54, %v751_v47  ;;  %v819_v29 = vmul.f32 %v2489_v48, %v755_v41  ;;  %v742_v46 = vsub.f32 %v646_v43, %v2189_v0  ;;  %v631_v50 = vmul.f32 0.6931472, %v1154_v8  ;;  %v2496_v0 = vld [vmem:[#allocation39_spill] sm:$0xff] }
 0x1cc   :  { %vm2493_vm0 = vcmp.eq.s32.totalorder %v2492_v3, 1  ;;  %v744_v59 = vsub.f32 %v648_v14, %v728_v45  ;;  %v908_v4 = vadd.s32 8, %v907_v2  ;;  %1161 = vrcp.f32 %v892_v39  ;;  %v2503_v14 = vld [vmem:[#allocation44_spill] sm:$0xff] }
 0x1cd   :  { %v715_v63 = vsel %vm2493_vm0, %v2491_v9, %v2490_v27  ;;  %v851_v60 = vsel %vm850_vm11, %v815_v1, 0.0  ;;  %v852_v5 = vsel %vm850_vm11, %v819_v29, 0.0  ;;  %vm2494_vm4 = vcmp.ne.s32.totalorder %v2459_v37, 4294967196  ;;  %v2505_v29 = vld [vmem:[#allocation43_spill] sm:$0xff] }
 0x1ce   :  { %v758_v44 = vsel %vm2494_vm4, %v742_v46, 0.0  ;;  %v649_v28 = vadd.f32 %v631_v50, %v2495_v11  ;;  %v1156_v19 = vpop.eup %1155  ;;  %1163 = vrcp.f32 %v893_v7  ;;  %vm2497_vm8 = vcmp.ne.s32.totalorder %v2476_v17, 4294967196 }
 0x1cf   :  { %v822_v23 = vmul.f32 %v2496_v0, %v758_v44  ;;  %v760_v51 = vsel %vm2497_vm8, %v744_v59, 0.0  ;;  %v853_v42 = vadd.f32 %v852_v5, %v851_v60  ;;  %v1158_v36 = vpop.eup %1157  ;;  %v627_v10 = vmul.f32 0.6931472, %v1156_v19  ;;  %v2507_v60 = vld [vmem:[#allocation45_spill] sm:$0xff] }
 0x1d0   :  { %v824_v45 = vmul.f32 %v2498_v49, %v760_v51  ;;  %v745_v16 = vsub.f32 %v649_v28, %v729_v32  ;;  %vm935_vm12 = vcmp.lt.s32.totalorder %v907_v2, 5  ;;  %v633_v37 = vmul.f32 0.6931472, %v1158_v36 }
 0x1d1   :  { %v846_v24 = vsel %vm828_vm14, %v822_v23, 0.0  ;;  %vm920_vm15 = vcmp.lt.s32.totalorder %v908_v4, 15  ;;  %vm2499_vm13 = vcmp.ne.s32.totalorder %v2471_v57, 4294967196  ;;  %v647_v25 = vadd.f32 %v627_v10, %v1623_v21 }
 0x1d2   :  { %v834_v20 = vsel %vm828_vm14, %v824_v45, 0.0  ;;  %v761_v61 = vsel %vm2499_vm13, %v745_v16, 0.0  ;;  %v847_v17 = vadd.f32 %v846_v24, %v2202_v31  ;;  %v1160_v62 = vpop.eup %1159  ;;  %v650_v32 = vadd.f32 %v633_v37, %v2440_v30 }
 0x1d3   :  { %v825_v39 = vmul.f32 %v2500_v33, %v761_v61  ;;  %v835_v47 = vadd.f32 %v834_v20, %v833_v12  ;;  %v743_v6 = vsub.f32 %v647_v25, %v727_v26  ;;  %v635_v43 = vmul.f32 0.6931472, %v1160_v62 }
 0x1d4   :  { %v1213_v8 = vmov 1.0   ;;  %vm928_vm1 = vcmp.lt.s32.totalorder %v908_v4, 10  ;;  %v746_v1 = vsub.f32 %v650_v32, %v730_v58  ;;  %v909_v41 = vadd.s32 16, %v907_v2 }
 0x1d5   :  { %v924_v7 = vsel %vm920_vm15, 2.0, %v1213_v8  ;;  %v841_v54 = vsel %vm828_vm14, %v825_v39, 0.0  ;;  %v895_v57 = vmul.f32 %v2175_v56, %v835_v47  ;;  %vm2501_vm3 = vcmp.ne.s32.totalorder %v2481_v35, 4294967196 }
 0x1d6   :  { %v759_v21 = vsel %vm2501_vm3, %v743_v6, 0.0  ;;  %v651_v31 = vadd.f32 %v635_v43, %v2442_v40  ;;  %v842_v18 = vadd.f32 %v841_v54, %v2217_v52  ;;  %v1214_v30 = vmov 0.5   ;;  %v1162_v58 = vpop.eup %1161 }
 0x1d7   :  { %v939_v12 = vsel %vm935_vm12, 1.0, %v1214_v30  ;;  %vm2502_vm2 = vcmp.eq.s32.totalorder %v2492_v3, 0  ;;  %v823_v48 = vmul.f32 %v2503_v14, %v759_v21  ;;  %vm2504_vm6 = vcmp.ne.s32.totalorder %v2479_v53, 4294967196 }
 0x1d8   :  { %v731_v26 = vsel %vm2502_vm2, %v2123_v22, %v715_v63  ;;  %v762_v56 = vsel %vm2504_vm6, %v746_v1, 0.0  ;;  %v902_v35 = vsel %vm886_vm9, %v895_v57, 0.0  ;;  %v897_v52 = vmul.f32 %v2166_v38, %v842_v18  ;;  %v1164_v50 = vpop.eup %1163 }
 0x1d9   :  { %v826_v40 = vmul.f32 %v2505_v29, %v762_v56  ;;  %v747_v46 = vsub.f32 %v651_v31, %v731_v26  ;;  %v932_v2 = vsel %vm928_vm1, 0.5, %v924_v7  ;;  %v854_v27 = vsel %vm850_vm11, %v823_v48, 0.0 }
 0x1da   :  { %vm913_vm5 = vcmp.lt.s32.totalorder %v909_v41, 20  ;;  %v943_v22 = vmul.f32 %v939_v12, %v902_v35  ;;  %vm2506_vm0 = vcmp.ne.s32.totalorder %v2492_v3, 4294967196  ;;  %v855_v13 = vadd.f32 %v854_v27, %v853_v42 }
 0x1db   :  { %v763_v53 = vsel %vm2506_vm0, %v747_v46, 0.0  ;;  %v848_v9 = vsel %vm828_vm14, %v826_v40, 0.0  ;;  %v903_v63 = vsel %vm887_vm7, %v897_v52, 0.0  ;;  %v1215_v4 = vmov 1.5  }
 0x1dc   :  { %v827_v59 = vmul.f32 %v2507_v60, %v763_v53  ;;  %v849_v5 = vadd.f32 %v848_v9, %v847_v17  ;;  %v944_v38 = vmul.f32 %v932_v2, %v903_v63  ;;  %v917_v44 = vsel %vm913_vm5, 1.0, %v1215_v4 }
 0x1dd   :  { %v971_v19 = vsel %vm828_vm14, %v943_v22, 0.0  ;;  %vm2508_vm7 = vcmp.gt.f32.partialorder %v2485_v15, 0.0 }
 0x1de   :  { %v856_v11 = vsel %vm850_vm11, %v827_v59, 0.0  ;;  %v899_v28 = vmul.f32 %v1162_v58, %v849_v5  ;;  %v972_v3 = vsel %vm828_vm14, %v944_v38, 0.0 }
 0x1df   :  { %v857_v0 = vadd.f32 %v856_v11, %v855_v13  ;;  %v973_v23 = vadd.f32 %v972_v3, %v971_v19 }
 0x1e0   :  { %v904_v51 = vsel %vm888_vm10, %v899_v28, 0.0 }
 0x1e1   :  { %v901_v55 = vmul.f32 %v1164_v50, %v857_v0  ;;  %v945_v42 = vmul.f32 %v917_v44, %v904_v51 }
 0x1e3   :  { %v905_v36 = vsel %vm2508_vm7, %v901_v55, 0.0  ;;  %v974_v49 = vsel %vm828_vm14, %v945_v42, 0.0 }
 0x1e4   :  { %v946_v45 = vmul.f32 1.5, %v905_v36  ;;  %v975_v16 = vadd.f32 %v974_v49, %v973_v23 }
 0x1e6   :  { %v976_v10 = vsel %vm850_vm11, %v946_v45, 0.0 }
 0x1e7   :  { %v977_v24 = vadd.f32 %v976_v10, %v975_v16 }
 0x1e9   :  { %978 = vadd.xlane.f32.xlu1 %v977_v24 }
 0x1fb   :  { %v963_v37 = vpop.xlane.xlu0 %962 }
 0x1fc   :  { %v964_v20 = vrot.slane %v963_v37, 4 }
 0x1fe   :  { %v965_v61 = vadd.f32 %v964_v20, %v963_v37 }
 0x200   :  { %v966_v25 = vrot.slane %v965_v61, 2 }
 0x202   :  { %v967_v17 = vadd.f32 %v966_v25, %v965_v61 }
 0x204   :  { %v968_v34 = vrot.slane %v967_v17, 1 }
 0x206   :  { %v969_v62 = vadd.f32 %v968_v34, %v967_v17 }
 0x208   :  { %1012 = vpush %v969_v62 }
 0x239   :  { %s1013_s0 = spop %1012 }
 0x23a   :  { %s987_s25 = smax.f32 %s1216_s24, %s1013_s0 }
 0x23b   :  { %v988_v15 = vstv %s987_s25 }
 0x23c   :  { %1165 = vrcp.f32 %v988_v15 }
 0x246   :  { %v1166_v7 = vpop.eup %1165 }
 0x276   :  { %v979_v33 = vpop.xlane.xlu1 %978 }
 0x277   :  { %v980_v39 = vrot.slane %v979_v33, 4 }
 0x279   :  { %v981_v32 = vadd.f32 %v980_v39, %v979_v33 }
 0x27b   :  { %v982_v47 = vrot.slane %v981_v32, 2 }
 0x27d   :  { %v983_v6 = vadd.f32 %v982_v47, %v981_v32 }
 0x27f   :  { %v984_v43 = vrot.slane %v983_v6, 1 }
 0x281   :  { %v985_v8 = vadd.f32 %v984_v43, %v983_v6 }
 0x283   :  { %1014 = vpush %v985_v8 }
 0x284   :  { %1016 = vpush %v1166_v7 }
 0x2b4   :  { %s1015_s27 = spop %1014 }
 0x2b5   :  { %s1017_s30 = spop %1016 }
 0x2b6   :  { %s991_s3 = smul.f32 %s1017_s30, %s1015_s27 }
 0x2b8   :  { %v992_v54 = vstv %s991_s3 }
 0x2b9   :  { %993 = vst.msk [vmem:[#allocation2] sm:$0x1] %vm850_vm11, %v992_v54 }
 0x2ba   :  { %1194 = shalt.err (!%p1191_p4)
}
 0x2bb   :  { %s1195_s8 = scalar_lea.hbm %s2316_s2, 16 }
 0x2bc   :  { %p1196_p5 = scmp.ne.s32.totalorder %s2316_s2, %s1195_s8  ;;  %p1199_p6 = scmp.lt.u32.totalorder %s1195_s8, %s2316_s2 }
 0x2be   :  { %p1201_p7 = pnand %p1199_p6, %p1196_p5 }
 0x2c0   :  { %1204 = shalt.err (!%p1201_p7)
}
 0x2c1   :  { %1003 = dma.vmem_to_hbm [thread:$0]  %s1001_s29, 16, %s2316_s2, [#allocation3]  }
 0x2c2   :  { %1205 = dma.done.wait [#allocation3], 16  }
 0x2c3   :  { %1206 = vsyncadd [#allocation3], 4294967280 }
 0x2c4   :  { %1007 = vsyncpa [#allocation3], 1 }

</bundles_post_ra>
